<compile_context>
chip_gen: v6e
topology: v6e:2x2x1
jax: 0.10.0
libtpu: 0.0.40
codegen_flags: <defaults>
</compile_context>

<pallas_src>
import functools

import jax
import jax.numpy as jnp
from jax import lax
from jax.experimental import pallas as pl
from jax.experimental.pallas import tpu as pltpu

LANE = 128


def _round_up(n, m):
    return (n + m - 1) // m * m


# ----------------------------- Pallas kernel -----------------------------

def _simple_pose_kernel(
    x_ref,
    w_in_ref, b_in_ref,
    w1_ref, b1_ref, w2_ref, b2_ref,          # stacked residual-block params (L,H,H)/(L,1,H)
    wh1_ref, bh1_ref,                         # fused head layer 1 (concat of both heads)
    wh2_ref, bh2_ref,                         # fused head layer 2 (block-diagonal)
    wh3_ref, bh3_ref,                         # fused head layer 3 (block-diag, lane-padded)
    out_ref,                                  # (TB, OUT_PAD) lane-dense packed output
):
    f32 = jnp.float32

    def mm(a, w):
        # bf16 MXU matmul with f32 accumulation.
        return jnp.dot(a.astype(w.dtype), w, preferred_element_type=f32)

    # input_linear_2d (K dim zero-padded to 128 in the wrapper; pads contribute 0)
    h = mm(x_ref[...], w_in_ref[...]) + b_in_ref[...]

    # residual MLP blocks: Linear+BN(folded)+ReLU (+Dropout=id) x2, residual add.
    num_layers = w1_ref.shape[0]

    def block(l, h):
        y = jnp.maximum(mm(h, w1_ref[l]) + b1_ref[l], 0.0)
        y = jnp.maximum(mm(y, w2_ref[l]) + b2_ref[l], 0.0)
        return h + y

    h = lax.fori_loop(0, num_layers, block, h, unroll=True)

    # fused heads: single matmul chain producing the packed (pose | action | pad) slab
    t = jnp.maximum(mm(h, wh1_ref[...]) + bh1_ref[...], 0.0)
    t = jnp.maximum(mm(t, wh2_ref[...]) + bh2_ref[...], 0.0)
    out_ref[...] = mm(t, wh3_ref[...]) + bh3_ref[...]


# ----------------------------- wrapper -----------------------------

def prepare_fused_params(p, total_joints, total_actions, weight_dtype=jnp.bfloat16):
    """Fuse the two heads (concat layer-1, block-diag layers 2/3, lane-pad the
    output layer), lane-pad w_in's K dim, and cast matmul weights to bf16."""
    f32 = jnp.float32
    H2 = p["wp1"].shape[1]
    H4 = p["wp2"].shape[1]
    d_pose = total_joints * 3
    out_dim = d_pose + total_actions
    out_pad = _round_up(max(out_dim, LANE), LANE)

    # input linear: pad the K (=2*J) dim up to a lane multiple (zero rows).
    d_in = p["w_in"].shape[0]
    d_in_pad = _round_up(max(d_in, LANE), LANE)
    w_in = p["w_in"]
    if d_in_pad != d_in:
        w_in = jnp.pad(w_in, ((0, d_in_pad - d_in), (0, 0)))

    # head layer 1: shared input h -> concat along output axis
    wh1 = jnp.concatenate([p["wp1"], p["wa1"]], axis=1)          # (H, 2*H2)
    bh1 = jnp.concatenate([p["bp1"], p["ba1"]], axis=1)          # (1, 2*H2)

    # head layer 2: block-diagonal so the two heads stay independent
    wh2 = jnp.zeros((2 * H2, 2 * H4), f32)
    wh2 = wh2.at[:H2, :H4].set(p["wp2"]).at[H2:, H4:].set(p["wa2"])
    bh2 = jnp.concatenate([p["bp2"], p["ba2"]], axis=1)          # (1, 2*H4)

    # head layer 3: block-diagonal and lane-padded (packed output slab)
    wh3 = jnp.zeros((2 * H4, out_pad), f32)
    wh3 = wh3.at[:H4, :d_pose].set(p["wp3"]).at[H4:, d_pose:out_dim].set(p["wa3"])
    bh3 = jnp.zeros((1, out_pad), f32)
    bh3 = bh3.at[:, :d_pose].set(p["bp3"]).at[:, d_pose:out_dim].set(p["ba3"])

    wd = weight_dtype
    fused = {
        "w_in": w_in.astype(wd), "b_in": p["b_in"],
        "w1": p["w1"].astype(wd), "b1": p["b1"],
        "w2": p["w2"].astype(wd), "b2": p["b2"],
        "wh1": wh1.astype(wd), "bh1": bh1,
        "wh2": wh2.astype(wd), "bh2": bh2,
        "wh3": wh3.astype(wd), "bh3": bh3,
    }
    return fused, out_pad, d_in_pad


_PARAM_ORDER = ("w_in", "b_in", "w1", "b1", "w2", "b2",
                "wh1", "bh1", "wh2", "bh2", "wh3", "bh3")


def simple_pose_forward(x_flat, fused, total_joints, total_actions, out_pad,
                        d_in_pad, batch_tile=256):
    """x_flat: (B, 2*J) float32.  Returns (joint_preds (B,J,3), action_preds (B,A))."""
    B, d_in = x_flat.shape

    # Effective batch tile: requested size, but never larger than the padded batch.
    bt = _round_up(min(batch_tile, _round_up(B, 8)), 8)
    bp = _round_up(B, bt)

    pad_rows, pad_cols = bp - B, d_in_pad - d_in
    if pad_rows or pad_cols:
        x_flat = jnp.pad(x_flat, ((0, pad_rows), (0, pad_cols)))

    args = [x_flat] + [fused[k] for k in _PARAM_ORDER]

    def const_spec(shape):
        # Full-array block, same block every grid step, single-buffered:
        # weights stay VMEM-resident without reserving 2x their footprint.
        n = len(shape)
        return pl.BlockSpec(shape, lambda b, _n=n: (0,) * _n,
                            pipeline_mode=pl.Buffered(1))

    # --- VMEM budget: single-buffered weights + double-buffered x/out tiles
    #     + f32 activation working set + headroom, clamped to [16, 64] MiB. ---
    param_bytes = sum(int(v.size) * v.dtype.itemsize for v in fused.values())
    H = fused["w_in"].shape[1]
    act_width = max(H, fused["wh1"].shape[1], out_pad)
    x_tile_bytes = bt * d_in_pad * 4
    out_tile_bytes = bt * out_pad * 4
    act_bytes = 6 * bt * act_width * 4
    vmem_limit = int(1.5 * (param_bytes + 2 * x_tile_bytes + 2 * out_tile_bytes
                            + act_bytes)) + (8 << 20)
    vmem_limit = max(16 << 20, min(vmem_limit, 64 << 20))

    # --- Advisory cost estimate for XLA's scheduler around the custom call. ---
    L = fused["w1"].shape[0]
    H2x2 = fused["wh1"].shape[1]
    H4x2 = fused["wh2"].shape[1]
    flops = 2 * bp * (d_in_pad * H + L * 2 * H * H
                      + H * H2x2 + H2x2 * H4x2 + H4x2 * out_pad)
    bytes_accessed = param_bytes + bp * d_in_pad * 4 + bp * out_pad * 4
    cost = pl.CostEstimate(flops=flops, transcendentals=0,
                           bytes_accessed=bytes_accessed)

    out = pl.pallas_call(
        _simple_pose_kernel,
        out_shape=jax.ShapeDtypeStruct((bp, out_pad), jnp.float32),
        grid=(bp // bt,),
        in_specs=[pl.BlockSpec((bt, d_in_pad), lambda b: (b, 0))]
                 + [const_spec(fused[k].shape) for k in _PARAM_ORDER],
        out_specs=pl.BlockSpec((bt, out_pad), lambda b: (b, 0)),
        compiler_params=pltpu.CompilerParams(
            dimension_semantics=("parallel",),   # 2-TC split on v7x (>=2 tiles)
            vmem_limit_bytes=vmem_limit),
        cost_estimate=cost,
    )(*args)

    d_pose = total_joints * 3
    joint_preds = out[:B, :d_pose].reshape(B, total_joints, 3)
    action_preds = out[:B, d_pose:d_pose + total_actions]
    return joint_preds, action_preds


# ------------------------ deterministic parameter init ------------------------

def _fold_bn(w, b, gamma, beta, mean, var, eps=1e-5):
    """Fold an eval-mode BatchNorm1d into the preceding Linear (y = x@w + b)."""
    scale = gamma / jnp.sqrt(var + eps)
    return w * scale[None, :], b * scale + (beta - mean * scale)


def make_params(key, total_joints, total_actions, hidden_size, num_layers):
    H, H2, H4 = hidden_size, hidden_size // 2, hidden_size // 4
    d_in = total_joints * 2

    def lin(k, din, dout):
        kw, kb = jax.random.split(k)
        w = 0.05 * jax.random.normal(kw, (din, dout), jnp.float32)
        b = 0.05 * jax.random.normal(kb, (dout,), jnp.float32)
        return w, b

    def bn(k, d):
        k1, k2, k3, k4 = jax.random.split(k, 4)
        gamma = 1.0 + 0.1 * jax.random.normal(k1, (d,), jnp.float32)
        beta = 0.1 * jax.random.normal(k2, (d,), jnp.float32)
        mean = 0.1 * jax.random.normal(k3, (d,), jnp.float32)
        var = 1.0 + 0.1 * jax.random.uniform(k4, (d,), jnp.float32)
        return gamma, beta, mean, var

    keys = iter(jax.random.split(key, 64))
    p = {}

    # input_linear_2d
    w, b = lin(next(keys), d_in, H)
    p["w_in"], p["b_in"] = w, b[None, :]

    # residual blocks (BN folded into each Linear)
    w1s, b1s, w2s, b2s = [], [], [], []
    for _ in range(num_layers):
        w, b = lin(next(keys), H, H)
        w, b = _fold_bn(w, b, *bn(next(keys), H))
        w1s.append(w); b1s.append(b[None, :])
        w, b = lin(next(keys), H, H)
        w, b = _fold_bn(w, b, *bn(next(keys), H))
        w2s.append(w); b2s.append(b[None, :])
    p["w1"] = jnp.stack(w1s); p["b1"] = jnp.stack(b1s)
    p["w2"] = jnp.stack(w2s); p["b2"] = jnp.stack(b2s)

    # output_3d_pose_linear head
    w, b = lin(next(keys), H, H2)
    w, b = _fold_bn(w, b, *bn(next(keys), H2))
    p["wp1"], p["bp1"] = w, b[None, :]
    w, b = lin(next(keys), H2, H4); p["wp2"], p["bp2"] = w, b[None, :]
    w, b = lin(next(keys), H4, total_joints * 3); p["wp3"], p["bp3"] = w, b[None, :]

    # output_label_linear head
    w, b = lin(next(keys), H, H2)
    w, b = _fold_bn(w, b, *bn(next(keys), H2))
    p["wa1"], p["ba1"] = w, b[None, :]
    w, b = lin(next(keys), H2, H4); p["wa2"], p["ba2"] = w, b[None, :]
    w, b = lin(next(keys), H4, total_actions); p["wa3"], p["ba3"] = w, b[None, :]
    return p


# ----------------------------- pure-JAX reference -----------------------------

def reference_forward(x_flat, p, total_joints, weight_dtype=jnp.bfloat16):
    """Un-fused, un-packed reference using the same bf16-quantized weights."""
    relu = lambda v: jnp.maximum(v, 0.0)

    def mm(a, w):
        return jnp.dot(a.astype(weight_dtype), w.astype(weight_dtype),
                       preferred_element_type=jnp.float32)

    h = mm(x_flat, p["w_in"]) + p["b_in"]
    for l in range(p["w1"].shape[0]):
        y = relu(mm(h, p["w1"][l]) + p["b1"][l])
        y = relu(mm(y, p["w2"][l]) + p["b2"][l])
        h = h + y
    q = relu(mm(h, p["wp1"]) + p["bp1"])
    q = relu(mm(q, p["wp2"]) + p["bp2"])
    pose = mm(q, p["wp3"]) + p["bp3"]
    a = relu(mm(h, p["wa1"]) + p["ba1"])
    a = relu(mm(a, p["wa2"]) + p["ba2"])
    act = mm(a, p["wa3"]) + p["ba3"]
    return pose.reshape(x_flat.shape[0], total_joints, 3), act


# ----------------------------------- main -----------------------------------

if __name__ == "__main__":
    TOTAL_JOINTS = 8
    TOTAL_ACTIONS = 6
    HIDDEN = 32
    NUM_LAYERS = 2
    BATCH = 512          # 2 batch tiles of 256 -> exercises the parallel grid axis
    BATCH_TILE = 256
    WEIGHT_DTYPE = jnp.bfloat16   # keep kernel and reference quantization in sync

    key = jax.random.PRNGKey(0)
    kx, kp = jax.random.split(key)

    # x: (B, total_joints, 2) -> flattened like PyTorch's x.view(B, -1)
    x = jax.random.normal(kx, (BATCH, TOTAL_JOINTS, 2), jnp.float32)
    x_flat = x.reshape(BATCH, -1)

    params = make_params(kp, TOTAL_JOINTS, TOTAL_ACTIONS, HIDDEN, NUM_LAYERS)
    fused, out_pad, d_in_pad = prepare_fused_params(
        params, TOTAL_JOINTS, TOTAL_ACTIONS, weight_dtype=WEIGHT_DTYPE)

    fwd = jax.jit(functools.partial(
        simple_pose_forward,
        total_joints=TOTAL_JOINTS, total_actions=TOTAL_ACTIONS,
        out_pad=out_pad, d_in_pad=d_in_pad, batch_tile=BATCH_TILE))

    joint_preds, action_preds = fwd(x_flat, fused)
    jax.block_until_ready((joint_preds, action_preds))

    ref_joints, ref_actions = reference_forward(
        x_flat, params, TOTAL_JOINTS, weight_dtype=WEIGHT_DTYPE)
    assert joint_preds.shape == (BATCH, TOTAL_JOINTS, 3)
    assert action_preds.shape == (BATCH, TOTAL_ACTIONS)
    assert jnp.allclose(joint_preds, ref_joints, atol=1e-3, rtol=1e-3)
    assert jnp.allclose(action_preds, ref_actions, atol=1e-3, rtol=1e-3)

    print("KERNEL_OK")
</pallas_src>

<mosaic_0001>
module attributes {stable_mosaic.version = 11 : i64} {
  func.func @_simple_pose_kernel(%arg0: i32, %arg1: memref<256x128xf32, #tpu.memory_space<vmem>>, %arg2: memref<128x32xbf16, #tpu.memory_space<vmem>>, %arg3: memref<1x32xf32, #tpu.memory_space<vmem>>, %arg4: memref<2x32x32xbf16, #tpu.memory_space<vmem>>, %arg5: memref<2x1x32xf32, #tpu.memory_space<vmem>>, %arg6: memref<2x32x32xbf16, #tpu.memory_space<vmem>>, %arg7: memref<2x1x32xf32, #tpu.memory_space<vmem>>, %arg8: memref<32x32xbf16, #tpu.memory_space<vmem>>, %arg9: memref<1x32xf32, #tpu.memory_space<vmem>>, %arg10: memref<32x16xbf16, #tpu.memory_space<vmem>>, %arg11: memref<1x16xf32, #tpu.memory_space<vmem>>, %arg12: memref<16x128xbf16, #tpu.memory_space<vmem>>, %arg13: memref<1x128xf32, #tpu.memory_space<vmem>>, %arg14: memref<256x128xf32, #tpu.memory_space<vmem>>) attributes {dimension_semantics = [#tpu.dimension_semantics<parallel>], iteration_bounds = array<i64: 2>, scalar_prefetch = 0 : i64, scratch_operands = 0 : i64, tpu.core_type = #tpu.core_type<tc>, window_params = [{transform_indices = @transform_0, window_bounds = array<i64: 256, 128>}, {pipeline_mode = #tpu.pipeline_mode<synchronous>, transform_indices = @transform_1, window_bounds = array<i64: 128, 32>}, {pipeline_mode = #tpu.pipeline_mode<synchronous>, transform_indices = @transform_2, window_bounds = array<i64: 1, 32>}, {pipeline_mode = #tpu.pipeline_mode<synchronous>, transform_indices = @transform_3, window_bounds = array<i64: 2, 32, 32>}, {pipeline_mode = #tpu.pipeline_mode<synchronous>, transform_indices = @transform_4, window_bounds = array<i64: 2, 1, 32>}, {pipeline_mode = #tpu.pipeline_mode<synchronous>, transform_indices = @transform_5, window_bounds = array<i64: 2, 32, 32>}, {pipeline_mode = #tpu.pipeline_mode<synchronous>, transform_indices = @transform_6, window_bounds = array<i64: 2, 1, 32>}, {pipeline_mode = #tpu.pipeline_mode<synchronous>, transform_indices = @transform_7, window_bounds = array<i64: 32, 32>}, {pipeline_mode = #tpu.pipeline_mode<synchronous>, transform_indices = @transform_8, window_bounds = array<i64: 1, 32>}, {pipeline_mode = #tpu.pipeline_mode<synchronous>, transform_indices = @transform_9, window_bounds = array<i64: 32, 16>}, {pipeline_mode = #tpu.pipeline_mode<synchronous>, transform_indices = @transform_10, window_bounds = array<i64: 1, 16>}, {pipeline_mode = #tpu.pipeline_mode<synchronous>, transform_indices = @transform_11, window_bounds = array<i64: 16, 128>}, {pipeline_mode = #tpu.pipeline_mode<synchronous>, transform_indices = @transform_12, window_bounds = array<i64: 1, 128>}, {transform_indices = @transform_13, window_bounds = array<i64: 256, 128>}]} {
    %c0 = arith.constant 0 : index
    %c0_0 = arith.constant 0 : index
    %0 = vector.load %arg1[%c0, %c0_0] : memref<256x128xf32, #tpu.memory_space<vmem>>, vector<256x128xf32>
    %c0_1 = arith.constant 0 : index
    %c0_2 = arith.constant 0 : index
    %1 = vector.load %arg2[%c0_1, %c0_2] : memref<128x32xbf16, #tpu.memory_space<vmem>>, vector<128x32xbf16>
    %2 = arith.truncf %0 : vector<256x128xf32> to vector<256x128xbf16>
    %cst = arith.constant dense<0.000000e+00> : vector<256x32xf32>
    %3 = tpu.matmul %2, %1, %cst {dimension_numbers = #tpu.dot_dimension_numbers<[1], [0], [0], [1], [0, 0, 1, 1], [], []>} : vector<256x128xbf16>, vector<128x32xbf16>, vector<256x32xf32> -> vector<256x32xf32>
    %c0_3 = arith.constant 0 : index
    %c0_4 = arith.constant 0 : index
    %4 = vector.load %arg3[%c0_3, %c0_4] : memref<1x32xf32, #tpu.memory_space<vmem>>, vector<1x32xf32>
    %5 = vector.broadcast %4 : vector<1x32xf32> to vector<256x32xf32>
    %6 = arith.addf %3, %5 : vector<256x32xf32>
    %c0_i32 = arith.constant 0 : i32
    %7 = arith.index_cast %c0_i32 : i32 to index
    %c0_5 = arith.constant 0 : index
    %c0_6 = arith.constant 0 : index
    %8 = vector.load %arg4[%7, %c0_5, %c0_6] : memref<2x32x32xbf16, #tpu.memory_space<vmem>>, vector<1x32x32xbf16>
    %9 = vector.shape_cast %8 : vector<1x32x32xbf16> to vector<32x32xbf16>
    %10 = arith.truncf %6 : vector<256x32xf32> to vector<256x32xbf16>
    %cst_7 = arith.constant dense<0.000000e+00> : vector<256x32xf32>
    %11 = tpu.matmul %10, %9, %cst_7 {dimension_numbers = #tpu.dot_dimension_numbers<[1], [0], [0], [1], [0, 0, 1, 1], [], []>} : vector<256x32xbf16>, vector<32x32xbf16>, vector<256x32xf32> -> vector<256x32xf32>
    %12 = arith.index_cast %c0_i32 : i32 to index
    %c0_8 = arith.constant 0 : index
    %c0_9 = arith.constant 0 : index
    %13 = vector.load %arg5[%12, %c0_8, %c0_9] : memref<2x1x32xf32, #tpu.memory_space<vmem>>, vector<1x1x32xf32>
    %14 = vector.shape_cast %13 : vector<1x1x32xf32> to vector<1x32xf32>
    %15 = vector.broadcast %14 : vector<1x32xf32> to vector<256x32xf32>
    %16 = arith.addf %11, %15 : vector<256x32xf32>
    %cst_10 = arith.constant 0.000000e+00 : f32
    %17 = vector.broadcast %cst_10 : f32 to vector<256x32xf32>
    %18 = arith.maximumf %16, %17 : vector<256x32xf32>
    %19 = arith.index_cast %c0_i32 : i32 to index
    %c0_11 = arith.constant 0 : index
    %c0_12 = arith.constant 0 : index
    %20 = vector.load %arg6[%19, %c0_11, %c0_12] : memref<2x32x32xbf16, #tpu.memory_space<vmem>>, vector<1x32x32xbf16>
    %21 = vector.shape_cast %20 : vector<1x32x32xbf16> to vector<32x32xbf16>
    %22 = arith.truncf %18 : vector<256x32xf32> to vector<256x32xbf16>
    %cst_13 = arith.constant dense<0.000000e+00> : vector<256x32xf32>
    %23 = tpu.matmul %22, %21, %cst_13 {dimension_numbers = #tpu.dot_dimension_numbers<[1], [0], [0], [1], [0, 0, 1, 1], [], []>} : vector<256x32xbf16>, vector<32x32xbf16>, vector<256x32xf32> -> vector<256x32xf32>
    %24 = arith.index_cast %c0_i32 : i32 to index
    %c0_14 = arith.constant 0 : index
    %c0_15 = arith.constant 0 : index
    %25 = vector.load %arg7[%24, %c0_14, %c0_15] : memref<2x1x32xf32, #tpu.memory_space<vmem>>, vector<1x1x32xf32>
    %26 = vector.shape_cast %25 : vector<1x1x32xf32> to vector<1x32xf32>
    %27 = vector.broadcast %26 : vector<1x32xf32> to vector<256x32xf32>
    %28 = arith.addf %23, %27 : vector<256x32xf32>
    %cst_16 = arith.constant 0.000000e+00 : f32
    %29 = vector.broadcast %cst_16 : f32 to vector<256x32xf32>
    %30 = arith.maximumf %28, %29 : vector<256x32xf32>
    %31 = arith.addf %6, %30 : vector<256x32xf32>
    %c1_i32 = arith.constant 1 : i32
    %32 = arith.index_cast %c1_i32 : i32 to index
    %c0_17 = arith.constant 0 : index
    %c0_18 = arith.constant 0 : index
    %33 = vector.load %arg4[%32, %c0_17, %c0_18] : memref<2x32x32xbf16, #tpu.memory_space<vmem>>, vector<1x32x32xbf16>
    %34 = vector.shape_cast %33 : vector<1x32x32xbf16> to vector<32x32xbf16>
    %35 = arith.truncf %31 : vector<256x32xf32> to vector<256x32xbf16>
    %cst_19 = arith.constant dense<0.000000e+00> : vector<256x32xf32>
    %36 = tpu.matmul %35, %34, %cst_19 {dimension_numbers = #tpu.dot_dimension_numbers<[1], [0], [0], [1], [0, 0, 1, 1], [], []>} : vector<256x32xbf16>, vector<32x32xbf16>, vector<256x32xf32> -> vector<256x32xf32>
    %37 = arith.index_cast %c1_i32 : i32 to index
    %c0_20 = arith.constant 0 : index
    %c0_21 = arith.constant 0 : index
    %38 = vector.load %arg5[%37, %c0_20, %c0_21] : memref<2x1x32xf32, #tpu.memory_space<vmem>>, vector<1x1x32xf32>
    %39 = vector.shape_cast %38 : vector<1x1x32xf32> to vector<1x32xf32>
    %40 = vector.broadcast %39 : vector<1x32xf32> to vector<256x32xf32>
    %41 = arith.addf %36, %40 : vector<256x32xf32>
    %cst_22 = arith.constant 0.000000e+00 : f32
    %42 = vector.broadcast %cst_22 : f32 to vector<256x32xf32>
    %43 = arith.maximumf %41, %42 : vector<256x32xf32>
    %44 = arith.index_cast %c1_i32 : i32 to index
    %c0_23 = arith.constant 0 : index
    %c0_24 = arith.constant 0 : index
    %45 = vector.load %arg6[%44, %c0_23, %c0_24] : memref<2x32x32xbf16, #tpu.memory_space<vmem>>, vector<1x32x32xbf16>
    %46 = vector.shape_cast %45 : vector<1x32x32xbf16> to vector<32x32xbf16>
    %47 = arith.truncf %43 : vector<256x32xf32> to vector<256x32xbf16>
    %cst_25 = arith.constant dense<0.000000e+00> : vector<256x32xf32>
    %48 = tpu.matmul %47, %46, %cst_25 {dimension_numbers = #tpu.dot_dimension_numbers<[1], [0], [0], [1], [0, 0, 1, 1], [], []>} : vector<256x32xbf16>, vector<32x32xbf16>, vector<256x32xf32> -> vector<256x32xf32>
    %49 = arith.index_cast %c1_i32 : i32 to index
    %c0_26 = arith.constant 0 : index
    %c0_27 = arith.constant 0 : index
    %50 = vector.load %arg7[%49, %c0_26, %c0_27] : memref<2x1x32xf32, #tpu.memory_space<vmem>>, vector<1x1x32xf32>
    %51 = vector.shape_cast %50 : vector<1x1x32xf32> to vector<1x32xf32>
    %52 = vector.broadcast %51 : vector<1x32xf32> to vector<256x32xf32>
    %53 = arith.addf %48, %52 : vector<256x32xf32>
    %cst_28 = arith.constant 0.000000e+00 : f32
    %54 = vector.broadcast %cst_28 : f32 to vector<256x32xf32>
    %55 = arith.maximumf %53, %54 : vector<256x32xf32>
    %56 = arith.addf %31, %55 : vector<256x32xf32>
    %c2_i32 = arith.constant 2 : i32
    %c0_29 = arith.constant 0 : index
    %c0_30 = arith.constant 0 : index
    %57 = vector.load %arg8[%c0_29, %c0_30] : memref<32x32xbf16, #tpu.memory_space<vmem>>, vector<32x32xbf16>
    %58 = arith.truncf %56 : vector<256x32xf32> to vector<256x32xbf16>
    %cst_31 = arith.constant dense<0.000000e+00> : vector<256x32xf32>
    %59 = tpu.matmul %58, %57, %cst_31 {dimension_numbers = #tpu.dot_dimension_numbers<[1], [0], [0], [1], [0, 0, 1, 1], [], []>} : vector<256x32xbf16>, vector<32x32xbf16>, vector<256x32xf32> -> vector<256x32xf32>
    %c0_32 = arith.constant 0 : index
    %c0_33 = arith.constant 0 : index
    %60 = vector.load %arg9[%c0_32, %c0_33] : memref<1x32xf32, #tpu.memory_space<vmem>>, vector<1x32xf32>
    %61 = vector.broadcast %60 : vector<1x32xf32> to vector<256x32xf32>
    %62 = arith.addf %59, %61 : vector<256x32xf32>
    %cst_34 = arith.constant 0.000000e+00 : f32
    %63 = vector.broadcast %cst_34 : f32 to vector<256x32xf32>
    %64 = arith.maximumf %62, %63 : vector<256x32xf32>
    %c0_35 = arith.constant 0 : index
    %c0_36 = arith.constant 0 : index
    %65 = vector.load %arg10[%c0_35, %c0_36] : memref<32x16xbf16, #tpu.memory_space<vmem>>, vector<32x16xbf16>
    %66 = arith.truncf %64 : vector<256x32xf32> to vector<256x32xbf16>
    %cst_37 = arith.constant dense<0.000000e+00> : vector<256x16xf32>
    %67 = tpu.matmul %66, %65, %cst_37 {dimension_numbers = #tpu.dot_dimension_numbers<[1], [0], [0], [1], [0, 0, 1, 1], [], []>} : vector<256x32xbf16>, vector<32x16xbf16>, vector<256x16xf32> -> vector<256x16xf32>
    %c0_38 = arith.constant 0 : index
    %c0_39 = arith.constant 0 : index
    %68 = vector.load %arg11[%c0_38, %c0_39] : memref<1x16xf32, #tpu.memory_space<vmem>>, vector<1x16xf32>
    %69 = vector.broadcast %68 : vector<1x16xf32> to vector<256x16xf32>
    %70 = arith.addf %67, %69 : vector<256x16xf32>
    %cst_40 = arith.constant 0.000000e+00 : f32
    %71 = vector.broadcast %cst_40 : f32 to vector<256x16xf32>
    %72 = arith.maximumf %70, %71 : vector<256x16xf32>
    %c0_41 = arith.constant 0 : index
    %c0_42 = arith.constant 0 : index
    %73 = vector.load %arg12[%c0_41, %c0_42] : memref<16x128xbf16, #tpu.memory_space<vmem>>, vector<16x128xbf16>
    %74 = arith.truncf %72 : vector<256x16xf32> to vector<256x16xbf16>
    %cst_43 = arith.constant dense<0.000000e+00> : vector<256x128xf32>
    %75 = tpu.matmul %74, %73, %cst_43 {dimension_numbers = #tpu.dot_dimension_numbers<[1], [0], [0], [1], [0, 0, 1, 1], [], []>} : vector<256x16xbf16>, vector<16x128xbf16>, vector<256x128xf32> -> vector<256x128xf32>
    %c0_44 = arith.constant 0 : index
    %c0_45 = arith.constant 0 : index
    %76 = vector.load %arg13[%c0_44, %c0_45] : memref<1x128xf32, #tpu.memory_space<vmem>>, vector<1x128xf32>
    %77 = vector.broadcast %76 : vector<1x128xf32> to vector<256x128xf32>
    %78 = arith.addf %75, %77 : vector<256x128xf32>
    %c0_46 = arith.constant 0 : index
    %c0_47 = arith.constant 0 : index
    %79 = vector.load %arg14[%c0_46, %c0_47] : memref<256x128xf32, #tpu.memory_space<vmem>>, vector<256x128xf32>
    tpu.vector_store %arg14[%c0_46, %c0_47], %78 {strides = array<i32>} : memref<256x128xf32, #tpu.memory_space<vmem>>, vector<256x128xf32>,
    return
  }
  func.func @transform_0(%arg0: i32) -> (i32, i32) {
    %c0_i32 = arith.constant 0 : i32
    %c0_i32_0 = arith.constant 0 : i32
    return %arg0, %c0_i32 : i32, i32
  }
  func.func @transform_1(%arg0: i32) -> (i32, i32) {
    %c0_i32 = arith.constant 0 : i32
    %c0_i32_0 = arith.constant 0 : i32
    %c0_i32_1 = arith.constant 0 : i32
    return %c0_i32, %c0_i32_0 : i32, i32
  }
  func.func @transform_2(%arg0: i32) -> (i32, i32) {
    %c0_i32 = arith.constant 0 : i32
    %c0_i32_0 = arith.constant 0 : i32
    %c0_i32_1 = arith.constant 0 : i32
    return %c0_i32, %c0_i32_0 : i32, i32
  }
  func.func @transform_3(%arg0: i32) -> (i32, i32, i32) {
    %c0_i32 = arith.constant 0 : i32
    %c0_i32_0 = arith.constant 0 : i32
    %c0_i32_1 = arith.constant 0 : i32
    %c0_i32_2 = arith.constant 0 : i32
    return %c0_i32, %c0_i32_0, %c0_i32_1 : i32, i32, i32
  }
  func.func @transform_4(%arg0: i32) -> (i32, i32, i32) {
    %c0_i32 = arith.constant 0 : i32
    %c0_i32_0 = arith.constant 0 : i32
    %c0_i32_1 = arith.constant 0 : i32
    %c0_i32_2 = arith.constant 0 : i32
    return %c0_i32, %c0_i32_0, %c0_i32_1 : i32, i32, i32
  }
  func.func @transform_5(%arg0: i32) -> (i32, i32, i32) {
    %c0_i32 = arith.constant 0 : i32
    %c0_i32_0 = arith.constant 0 : i32
    %c0_i32_1 = arith.constant 0 : i32
    %c0_i32_2 = arith.constant 0 : i32
    return %c0_i32, %c0_i32_0, %c0_i32_1 : i32, i32, i32
  }
  func.func @transform_6(%arg0: i32) -> (i32, i32, i32) {
    %c0_i32 = arith.constant 0 : i32
    %c0_i32_0 = arith.constant 0 : i32
    %c0_i32_1 = arith.constant 0 : i32
    %c0_i32_2 = arith.constant 0 : i32
    return %c0_i32, %c0_i32_0, %c0_i32_1 : i32, i32, i32
  }
  func.func @transform_7(%arg0: i32) -> (i32, i32) {
    %c0_i32 = arith.constant 0 : i32
    %c0_i32_0 = arith.constant 0 : i32
    %c0_i32_1 = arith.constant 0 : i32
    return %c0_i32, %c0_i32_0 : i32, i32
  }
  func.func @transform_8(%arg0: i32) -> (i32, i32) {
    %c0_i32 = arith.constant 0 : i32
    %c0_i32_0 = arith.constant 0 : i32
    %c0_i32_1 = arith.constant 0 : i32
    return %c0_i32, %c0_i32_0 : i32, i32
  }
  func.func @transform_9(%arg0: i32) -> (i32, i32) {
    %c0_i32 = arith.constant 0 : i32
    %c0_i32_0 = arith.constant 0 : i32
    %c0_i32_1 = arith.constant 0 : i32
    return %c0_i32, %c0_i32_0 : i32, i32
  }
  func.func @transform_10(%arg0: i32) -> (i32, i32) {
    %c0_i32 = arith.constant 0 : i32
    %c0_i32_0 = arith.constant 0 : i32
    %c0_i32_1 = arith.constant 0 : i32
    return %c0_i32, %c0_i32_0 : i32, i32
  }
  func.func @transform_11(%arg0: i32) -> (i32, i32) {
    %c0_i32 = arith.constant 0 : i32
    %c0_i32_0 = arith.constant 0 : i32
    %c0_i32_1 = arith.constant 0 : i32
    return %c0_i32, %c0_i32_0 : i32, i32
  }
  func.func @transform_12(%arg0: i32) -> (i32, i32) {
    %c0_i32 = arith.constant 0 : i32
    %c0_i32_0 = arith.constant 0 : i32
    %c0_i32_1 = arith.constant 0 : i32
    return %c0_i32, %c0_i32_0 : i32, i32
  }
  func.func @transform_13(%arg0: i32) -> (i32, i32) {
    %c0_i32 = arith.constant 0 : i32
    %c0_i32_0 = arith.constant 0 : i32
    return %arg0, %c0_i32 : i32, i32
  }
}

</mosaic_0001>

<bundles_post_ra>
// kernel: simple_pose_forward.1
= control target key start
LH: loop header
LB: loop body
LE: loop exit
PB: predicated region body
PF: predicated region fallthrough
CT: control target
= control target key end

     0   :  { %s3523_s25 = smov 0   ;;  %s4342_s0 = inlined_call_operand.vmem [shape: f32[512,128], index: 0, kind: input, shape index: {}]   ;;  %s4343_s1 = inlined_call_operand.vmem [shape: bf16[128,32], index: 1, kind: input, shape index: {}]   ;;  %s4344_s2 = inlined_call_operand.vmem [shape: f32[1,32], index: 2, kind: input, shape index: {}]   ;;  %s4345_s3 = inlined_call_operand.vmem [shape: bf16[2,32,32], index: 3, kind: input, shape index: {}]   ;;  %s4346_s4 = inlined_call_operand.vmem [shape: f32[2,1,32], index: 4, kind: input, shape index: {}]   ;;  %s4347_s5 = inlined_call_operand.vmem [shape: bf16[2,32,32], index: 5, kind: input, shape index: {}]   ;;  %s4348_s6 = inlined_call_operand.vmem [shape: f32[2,1,32], index: 6, kind: input, shape index: {}]   ;;  %s4349_s7 = inlined_call_operand.vmem [shape: bf16[32,32], index: 7, kind: input, shape index: {}]   ;;  %s4350_s8 = inlined_call_operand.vmem [shape: f32[1,32], index: 8, kind: input, shape index: {}]   ;;  %s4351_s9 = inlined_call_operand.vmem [shape: bf16[32,16], index: 9, kind: input, shape index: {}]   ;;  %s4352_s10 = inlined_call_operand.vmem [shape: f32[1,16], index: 10, kind: input, shape index: {}]   ;;  %s4353_s11 = inlined_call_operand.vmem [shape: bf16[16,128], index: 11, kind: input, shape index: {}]   ;;  %s4354_s12 = inlined_call_operand.vmem [shape: f32[1,128], index: 12, kind: input, shape index: {}]   ;;  %s4355_s13 = inlined_call_operand.vmem [shape: f32[512,128], index: 13, kind: output, shape index: {}]  }
   0x1 LB: > { %s2803_s26 = sadd.s32 4294967295, %s3451_s25   ;;  %p2807_p0 = scmp.ge.s32.totalorder %s3451_s25, 1  ;;  %s3451_s25 = sphi %s3523_s25, %s23_s25  }
   0x2   : > { %p388_p1 = scmp.lt.s32.totalorder %s3451_s25, 3 }
   0x4   : > { %p389_p2 = pnand %p2807_p0, %p388_p1 }
   0x5   : > { %s2808_s29 = sshll.u32 (!%p389_p2), %s2803_s26, 5 }
   0x6   : > { %392 = sbr.rel (%p389_p2) target bundleno = 1746 (0x6d2), region = 72  ;;  %p433_p3 = scmp.lt.s32.totalorder (!%p389_p2), %s2808_s29, 63 }
   0xb   : > { %v3424_v0 = vld [vmem:[%s4343_s1 + $0x38] sm:$0xff]   ;;  %v3425_v1 = vld [vmem:[%s4343_s1 + $0x30] sm:$0xff]   ;;  %s4357_s29 = smov (!%p433_p3, %s2808_s29), 63  ;;  %v3426_v2 = vld [vmem:[%s4343_s1 + $0x28] sm:$0xff]   ;;  %vm764_vm0 = vcmask 261120   ;;  %vm2505_vm1 = vcmask 130048  }
   0xc   : > { %3114 = vmatprep.subr.bf16.mxu0 %v3424_v0  ;;  %s2809_s17 = sshll.u32 %s4357_s29, 3  ;;  %v3427_v3 = vld [vmem:[%s4343_s1 + $0x20] sm:$0xff]   ;;  %v3428_v7 = vld [vmem:[%s4343_s1 + $0x18] sm:$0xff]   ;;  %v3429_v8 = vld [vmem:[%s4343_s1 + $0x10] sm:$0xff]  }
   0xd   : > { %3115 = vmatpush3.bf16.msra.mxu0 %v3424_v0  ;;  %s3548_s20 = scalar_lea.vmem %s4342_s0, %s2809_s17  ;;  %v3430_v9 = vld [vmem:[%s4343_s1 + $0x8] sm:$0xff]   ;;  %v3431_v10 = vld [vmem:[%s4343_s1] sm:$0xff]   ;;  %s4273_s19 = scalar_lea.vmem %s4355_s13, %s2809_s17 }
   0xe   : > { %3116 = vmatprep.subr.bf16.mxu0 %v3425_v1  ;;  %v445_v4 = vld [vmem:[%s3548_s20] sm:$0xff]  ;;  %v446_v5 = vld [vmem:[%s3548_s20 + $0x8] sm:$0xff]  ;;  %v447_v11 = vld [vmem:[%s3548_s20 + $0x10] sm:$0xff] }
   0xf   : > { %v493_v6 = vpack.c.bf16 %v446_v5, %v445_v4  ;;  %v448_v12 = vld [vmem:[%s3548_s20 + $0x18] sm:$0xff]  ;;  %v449_v13 = vld [vmem:[%s3548_s20 + $0x20] sm:$0xff]  ;;  %v450_v14 = vld [vmem:[%s3548_s20 + $0x28] sm:$0xff] }
  0x10   : > { %v494_v15 = vpack.c.bf16 %v448_v12, %v447_v11  ;;  %v495_v16 = vpack.c.bf16 %v450_v14, %v449_v13  ;;  %v451_v17 = vld [vmem:[%s3548_s20 + $0x30] sm:$0xff]  ;;  %v452_v18 = vld [vmem:[%s3548_s20 + $0x38] sm:$0xff]  ;;  %v453_v19 = vld [vmem:[%s3548_s20 + $0x40] sm:$0xff] }
  0x11   : > { %3117 = vmatpush3.bf16.msra.mxu0 %v3425_v1  ;;  %3130 = vmatprep.mubr.bf16.mxu0 %v493_v6  ;;  %v454_v20 = vld [vmem:[%s3548_s20 + $0x48] sm:$0xff]  ;;  %v496_v21 = vpack.c.bf16 %v452_v18, %v451_v17  ;;  %v455_v23 = vld [vmem:[%s3548_s20 + $0x50] sm:$0xff]  ;;  %v456_v24 = vld [vmem:[%s3548_s20 + $0x58] sm:$0xff] }
  0x12   : > { %3118 = vmatprep.subr.bf16.mxu0 %v3426_v2  ;;  %v497_v22 = vpack.c.bf16 %v454_v20, %v453_v19  ;;  %v457_v25 = vld [vmem:[%s3548_s20 + $0x60] sm:$0xff]  ;;  %v458_v26 = vld [vmem:[%s3548_s20 + $0x68] sm:$0xff]  ;;  %v498_v27 = vpack.c.bf16 %v456_v24, %v455_v23  ;;  %v459_v29 = vld [vmem:[%s3548_s20 + $0x70] sm:$0xff] }
  0x13   : > { %v499_v28 = vpack.c.bf16 %v458_v26, %v457_v25  ;;  %v460_v30 = vld [vmem:[%s3548_s20 + $0x78] sm:$0xff]  ;;  %v461_v31 = vld [vmem:[%s3548_s20 + $0x80] sm:$0xff]  ;;  %v462_v32 = vld [vmem:[%s3548_s20 + $0x88] sm:$0xff] }
  0x14   : > { %v500_v33 = vpack.c.bf16 %v460_v30, %v459_v29  ;;  %v501_v34 = vpack.c.bf16 %v462_v32, %v461_v31  ;;  %v463_v35 = vld [vmem:[%s3548_s20 + $0x90] sm:$0xff]  ;;  %v464_v36 = vld [vmem:[%s3548_s20 + $0x98] sm:$0xff]  ;;  %v465_v37 = vld [vmem:[%s3548_s20 + $0xa0] sm:$0xff] }
  0x15   : > { %3119 = vmatpush3.bf16.msra.mxu0 %v3426_v2  ;;  %v466_v38 = vld [vmem:[%s3548_s20 + $0xa8] sm:$0xff]  ;;  %v502_v39 = vpack.c.bf16 %v464_v36, %v463_v35  ;;  %v467_v41 = vld [vmem:[%s3548_s20 + $0xb0] sm:$0xff]  ;;  %v468_v42 = vld [vmem:[%s3548_s20 + $0xb8] sm:$0xff] }
  0x16   : > { %3120 = vmatprep.subr.bf16.mxu0 %v3427_v3  ;;  %v503_v40 = vpack.c.bf16 %v466_v38, %v465_v37  ;;  %v469_v43 = vld [vmem:[%s3548_s20 + $0xc0] sm:$0xff]  ;;  %v470_v44 = vld [vmem:[%s3548_s20 + $0xc8] sm:$0xff]  ;;  %v504_v45 = vpack.c.bf16 %v468_v42, %v467_v41  ;;  %v471_v47 = vld [vmem:[%s3548_s20 + $0xd0] sm:$0xff] }
  0x17   : > { %v505_v46 = vpack.c.bf16 %v470_v44, %v469_v43  ;;  %v472_v48 = vld [vmem:[%s3548_s20 + $0xd8] sm:$0xff]  ;;  %v473_v49 = vld [vmem:[%s3548_s20 + $0xe0] sm:$0xff]  ;;  %v474_v50 = vld [vmem:[%s3548_s20 + $0xe8] sm:$0xff] }
  0x18   : > { %v506_v51 = vpack.c.bf16 %v472_v48, %v471_v47  ;;  %v507_v52 = vpack.c.bf16 %v474_v50, %v473_v49  ;;  %v475_v53 = vld [vmem:[%s3548_s20 + $0xf0] sm:$0xff]  ;;  %v476_v54 = vld [vmem:[%s3548_s20 + $0xf8] sm:$0xff]  ;;  %v3432_v56 = vld [vmem:[%s4345_s3 + $0x8] sm:$0xff]  }
  0x19   : > { %3121 = vmatpush3.bf16.msra.mxu0 %v3427_v3  ;;  %v508_v55 = vpack.c.bf16 %v476_v54, %v475_v53  ;;  %3162 = vmatprep.subr.bf16.mxu1 %v3432_v56  ;;  %v3433_v57 = vld [vmem:[%s4345_s3] sm:$0xff]   ;;  %v3434_v58 = vld [vmem:[%s4347_s5 + $0x8] sm:$0xff]  }
  0x1a   : > { %3122 = vmatprep.subr.bf16.mxu0 %v3428_v7  ;;  %3163 = vmatpush3.bf16.msra.mxu1 %v3432_v56  ;;  %v3609_v62 = vld [vmem:[%s4344_s2] ss:$0 sm:$0xff] }
  0x1b   : > { %3164 = vmatprep.subr.bf16.mxu1 %v3433_v57 }
  0x1d   : > { %3123 = vmatpush3.bf16.msra.mxu0 %v3428_v7 }
  0x1e   : > { %3124 = vmatprep.subr.bf16.mxu0 %v3429_v8  ;;  %3165 = vmatpush3.bf16.msra.mxu1 %v3433_v57 }
  0x1f   : > { %3198 = vmatprep.subr.bf16.mxu1 %v3434_v58 }
  0x21   : > { %3125 = vmatpush3.bf16.msra.mxu0 %v3429_v8  ;;  %v3435_v8 = vld [vmem:[%s4347_s5] sm:$0xff]  }
  0x22   : > { %3126 = vmatprep.subr.bf16.mxu0 %v3430_v9 }
  0x25   : > { %3127 = vmatpush3.bf16.msra.mxu0 %v3430_v9 }
  0x26   : > { %3128 = vmatprep.subr.bf16.mxu0 %v3431_v10 }
  0x29   : > { %3129 = vmatpush3.bf16.msra.mxu0 %v3431_v10 }
  0x2c   : > { %3131 = vmatmul.mubr.bf16.vlgmr.msra.gmra.mxu0 %v494_v15 }
  0x2d   : > { %3134 = vmatprep.mubr.bf16.mxu0 %v495_v16 }
  0x34   : > { %3135 = vmatmul.mubr.bf16.gmra.mxu0 %v496_v21 }
  0x35   : > { %3138 = vmatprep.mubr.bf16.mxu0 %v497_v22 }
  0x3c   : > { %3139 = vmatmul.mubr.bf16.gmra.mxu0 %v498_v27 }
  0x3d   : > { %3142 = vmatprep.mubr.bf16.mxu0 %v499_v28 }
  0x44   : > { %3143 = vmatmul.mubr.bf16.gmra.mxu0 %v500_v33 }
  0x45   : > { %3146 = vmatprep.mubr.bf16.mxu0 %v501_v34 }
  0x4c   : > { %3147 = vmatmul.mubr.bf16.gmra.mxu0 %v502_v39 }
  0x4d   : > { %3150 = vmatprep.mubr.bf16.mxu0 %v503_v40 }
  0x54   : > { %3151 = vmatmul.mubr.bf16.gmra.mxu0 %v504_v45 }
  0x55   : > { %3154 = vmatprep.mubr.bf16.mxu0 %v505_v46 }
  0x5c   : > { %3155 = vmatmul.mubr.bf16.gmra.mxu0 %v506_v51 }
  0x5d   : > { %3158 = vmatprep.mubr.bf16.mxu0 %v507_v52 }
  0x64   : > { %3159 = vmatmul.mubr.bf16.gmra.mxu0 %v508_v55 }
  0xec   : > { %v3132_v59 = vpop.f32.mrf.mxu0 }
  0xed   : > { %v3621_v3 = vadd.f32 %v3132_v59, %v3609_v62 }
  0xee   : > { %v598_v60 = vpop.f32.mrf.mxu0 }
  0xef   : > { %v3615_v1 = vadd.f32 %v3609_v62, %v598_v60 }
  0xf0   : > { %v3133_v61 = vpop.f32.mrf.mxu0 }
  0xf1   : > { %v3612_v63 = vadd.f32 %v3133_v61, %v3609_v62 }
  0xf2   : > { %v601_v0 = vpop.f32.mrf.mxu0 }
  0xf3   : > { %v3618_v2 = vadd.f32 %v3609_v62, %v601_v0  ;;  %v730_v6 = vpack.c.bf16 %v3612_v63, %v3621_v3 }
  0xf4   : > { %v3136_v4 = vpop.f32.mrf.mxu0 }
  0xf5   : > { %v729_v5 = vpack.c.bf16 %v3618_v2, %v3615_v1  ;;  %v3642_v14 = vadd.f32 %v3136_v4, %v3609_v62 }
  0xf6   : > { %v614_v7 = vpop.f32.mrf.mxu0 }
  0xf7   : > { %3166 = vmatprep.mubr.msk.bf16.mxu1 %vm764_vm0, %v729_v5  ;;  %v3636_v12 = vadd.f32 %v3609_v62, %v614_v7 }
  0xf8   : > { %v3137_v9 = vpop.f32.mrf.mxu0  ;;  %3167 = vmatmul.mubr.msk.bf16.vlgmr.msra.gmra.mxu1 %vm764_vm0, %v730_v6 }
  0xf9   : > { %3199 = vmatpush3.bf16.msra.mxu1 %v3434_v58  ;;  %v3633_v10 = vadd.f32 %v3137_v9, %v3609_v62 }
  0xfa   : > { %v617_v11 = vpop.f32.mrf.mxu0  ;;  %3200 = vmatprep.subr.bf16.mxu1 %v3435_v8 }
  0xfb   : > { %v3639_v13 = vadd.f32 %v3609_v62, %v617_v11  ;;  %v732_v17 = vpack.c.bf16 %v3633_v10, %v3642_v14 }
  0xfc   : > { %v3140_v15 = vpop.f32.mrf.mxu0 }
  0xfd   : > { %v731_v16 = vpack.c.bf16 %v3639_v13, %v3636_v12  ;;  %3201 = vmatpush3.bf16.msra.mxu1 %v3435_v8  ;;  %v3660_v24 = vadd.f32 %v3140_v15, %v3609_v62 }
  0xfe   : > { %v630_v18 = vpop.f32.mrf.mxu0 }
  0xff   : > { %3170 = vmatprep.mubr.msk.bf16.mxu1 %vm764_vm0, %v731_v16  ;;  %v3654_v22 = vadd.f32 %v3609_v62, %v630_v18 }
 0x100   : > { %v3141_v19 = vpop.f32.mrf.mxu0  ;;  %3171 = vmatmul.mubr.msk.bf16.gmra.mxu1 %vm764_vm0, %v732_v17 }
 0x101   : > { %v3651_v20 = vadd.f32 %v3141_v19, %v3609_v62 }
 0x102   : > { %v633_v21 = vpop.f32.mrf.mxu0 }
 0x103   : > { %v3657_v23 = vadd.f32 %v3609_v62, %v633_v21  ;;  %v734_v27 = vpack.c.bf16 %v3651_v20, %v3660_v24 }
 0x104   : > { %v3144_v25 = vpop.f32.mrf.mxu0 }
 0x105   : > { %v733_v26 = vpack.c.bf16 %v3657_v23, %v3654_v22  ;;  %v3678_v34 = vadd.f32 %v3144_v25, %v3609_v62 }
 0x106   : > { %v646_v28 = vpop.f32.mrf.mxu0 }
 0x107   : > { %3174 = vmatprep.mubr.msk.bf16.mxu1 %vm764_vm0, %v733_v26  ;;  %v3672_v32 = vadd.f32 %v3609_v62, %v646_v28  ;;  %v3436_v26 = vld [vmem:[%s4345_s3 + $0x18] sm:$0xff]  }
 0x108   : > { %v3145_v29 = vpop.f32.mrf.mxu0  ;;  %3175 = vmatmul.mubr.msk.bf16.gmra.mxu1 %vm764_vm0, %v734_v27  ;;  %v3437_v27 = vld [vmem:[%s4345_s3 + $0x10] sm:$0xff]   ;;  %3234 = vmatprep.subr.bf16.mxu0 %v3436_v26 }
 0x109   : > { %v3669_v30 = vadd.f32 %v3145_v29, %v3609_v62  ;;  %3412 = vmatprep.subr.bf16.mxu1 %v3436_v26  ;;  %3235 = vmatpush3.bf16.msra.mxu0 %v3436_v26  ;;  %v3767_v29 = vld [vmem:[%s4346_s4] ss:$0 sm:$0xff] }
 0x10a   : > { %v649_v31 = vpop.f32.mrf.mxu0  ;;  %3236 = vmatprep.subr.bf16.mxu0 %v3437_v27 }
 0x10b   : > { %v3675_v33 = vadd.f32 %v3609_v62, %v649_v31  ;;  %v736_v37 = vpack.c.bf16 %v3669_v30, %v3678_v34 }
 0x10c   : > { %v3148_v35 = vpop.f32.mrf.mxu0 }
 0x10d   : > { %v735_v36 = vpack.c.bf16 %v3675_v33, %v3672_v32  ;;  %v3696_v44 = vadd.f32 %v3148_v35, %v3609_v62  ;;  %3237 = vmatpush3.bf16.msra.mxu0 %v3437_v27 }
 0x10e   : > { %v662_v38 = vpop.f32.mrf.mxu0 }
 0x10f   : > { %3178 = vmatprep.mubr.msk.bf16.mxu1 %vm764_vm0, %v735_v36  ;;  %v3690_v42 = vadd.f32 %v3609_v62, %v662_v38 }
 0x110   : > { %v3149_v39 = vpop.f32.mrf.mxu0  ;;  %3179 = vmatmul.mubr.msk.bf16.gmra.mxu1 %vm764_vm0, %v736_v37 }
 0x111   : > { %v3687_v40 = vadd.f32 %v3149_v39, %v3609_v62 }
 0x112   : > { %v665_v41 = vpop.f32.mrf.mxu0 }
 0x113   : > { %v3693_v43 = vadd.f32 %v3609_v62, %v665_v41  ;;  %v738_v47 = vpack.c.bf16 %v3687_v40, %v3696_v44 }
 0x114   : > { %v3152_v45 = vpop.f32.mrf.mxu0 }
 0x115   : > { %v737_v46 = vpack.c.bf16 %v3693_v43, %v3690_v42  ;;  %v3714_v54 = vadd.f32 %v3152_v45, %v3609_v62 }
 0x116   : > { %v678_v48 = vpop.f32.mrf.mxu0 }
 0x117   : > { %3182 = vmatprep.mubr.msk.bf16.mxu1 %vm764_vm0, %v737_v46  ;;  %v3708_v52 = vadd.f32 %v3609_v62, %v678_v48 }
 0x118   : > { %v3153_v49 = vpop.f32.mrf.mxu0  ;;  %3183 = vmatmul.mubr.msk.bf16.gmra.mxu1 %vm764_vm0, %v738_v47 }
 0x119   : > { %v3705_v50 = vadd.f32 %v3153_v49, %v3609_v62 }
 0x11a   : > { %v681_v51 = vpop.f32.mrf.mxu0 }
 0x11b   : > { %v3711_v53 = vadd.f32 %v3609_v62, %v681_v51  ;;  %v740_v57 = vpack.c.bf16 %v3705_v50, %v3714_v54 }
 0x11c   : > { %v3156_v55 = vpop.f32.mrf.mxu0 }
 0x11d   : > { %v739_v56 = vpack.c.bf16 %v3711_v53, %v3708_v52  ;;  %v3732_v5 = vadd.f32 %v3156_v55, %v3609_v62 }
 0x11e   : > { %v694_v58 = vpop.f32.mrf.mxu0 }
 0x11f   : > { %3186 = vmatprep.mubr.msk.bf16.mxu1 %vm764_vm0, %v739_v56  ;;  %v3726_v0 = vadd.f32 %v3609_v62, %v694_v58 }
 0x120   : > { %v3157_v59 = vpop.f32.mrf.mxu0  ;;  %3187 = vmatmul.mubr.msk.bf16.gmra.mxu1 %vm764_vm0, %v740_v57 }
 0x121   : > { %v3723_v60 = vadd.f32 %v3157_v59, %v3609_v62 }
 0x122   : > { %v697_v61 = vpop.f32.mrf.mxu0 }
 0x123   : > { %v3729_v4 = vadd.f32 %v3609_v62, %v697_v61  ;;  %v742_v8 = vpack.c.bf16 %v3723_v60, %v3732_v5 }
 0x124   : > { %v3160_v6 = vpop.f32.mrf.mxu0 }
 0x125   : > { %v741_v7 = vpack.c.bf16 %v3729_v4, %v3726_v0  ;;  %v3750_v19 = vadd.f32 %v3160_v6, %v3609_v62 }
 0x126   : > { %v710_v9 = vpop.f32.mrf.mxu0 }
 0x127   : > { %3190 = vmatprep.mubr.msk.bf16.mxu1 %vm764_vm0, %v741_v7  ;;  %v3744_v17 = vadd.f32 %v3609_v62, %v710_v9 }
 0x128   : > { %v3161_v11 = vpop.f32.mrf.mxu0  ;;  %3191 = vmatmul.mubr.msk.bf16.gmra.mxu1 %vm764_vm0, %v742_v8 }
 0x129   : > { %v3741_v15 = vadd.f32 %v3161_v11, %v3609_v62 }
 0x12a   : > { %v713_v16 = vpop.f32.mrf.mxu0 }
 0x12b   : > { %v3747_v18 = vadd.f32 %v3609_v62, %v713_v16  ;;  %v744_v25 = vpack.c.bf16 %v3741_v15, %v3750_v19 }
 0x12d   : > { %v743_v21 = vpack.c.bf16 %v3747_v18, %v3744_v17 }
 0x12f   : > { %3194 = vmatprep.mubr.msk.bf16.mxu1 %vm764_vm0, %v743_v21 }
 0x130   : > { %3195 = vmatmul.mubr.msk.bf16.gmra.mxu1 %vm764_vm0, %v744_v25 }
 0x1b8   : > { %v3168_v62 = vpop.f32.mrf.mxu1 }
 0x1b9   : > { %v856_v37 = vadd.f32 %v3168_v62, %v3767_v29 }
 0x1ba   : > { %v847_v28 = vpop.f32.mrf.mxu1 }
 0x1bb   : > { %v848_v35 = vadd.f32 %v3767_v29, %v847_v28  ;;  %v976_v48 = vmax.f32 %v856_v37, 0.0 }
 0x1bc   : > { %v3169_v31 = vpop.f32.mrf.mxu1 }
 0x1bd   : > { %v859_v36 = vadd.f32 %v3169_v31, %v3767_v29  ;;  %v974_v46 = vmax.f32 %v848_v35, 0.0 }
 0x1be   : > { %v850_v38 = vpop.f32.mrf.mxu1 }
 0x1bf   : > { %v851_v39 = vadd.f32 %v3767_v29, %v850_v38  ;;  %v977_v41 = vmax.f32 %v859_v36, 0.0 }
 0x1c0   : > { %v3172_v45 = vpop.f32.mrf.mxu1 }
 0x1c1   : > { %v975_v47 = vmax.f32 %v851_v39, 0.0  ;;  %v1011_v55 = vpack.c.bf16 %v977_v41, %v976_v48  ;;  %v872_v59 = vadd.f32 %v3172_v45, %v3767_v29 }
 0x1c2   : > { %v863_v49 = vpop.f32.mrf.mxu1 }
 0x1c3   : > { %v1010_v51 = vpack.c.bf16 %v975_v47, %v974_v46  ;;  %v864_v57 = vadd.f32 %v3767_v29, %v863_v49  ;;  %v980_v16 = vmax.f32 %v872_v59, 0.0 }
 0x1c4   : > { %v3173_v56 = vpop.f32.mrf.mxu1 }
 0x1c5   : > { %v875_v58 = vadd.f32 %v3173_v56, %v3767_v29  ;;  %3202 = vmatprep.mubr.msk.bf16.mxu1 %vm764_vm0, %v1010_v51  ;;  %v978_v9 = vmax.f32 %v864_v57, 0.0 }
 0x1c6   : > { %v866_v61 = vpop.f32.mrf.mxu1  ;;  %3203 = vmatmul.mubr.msk.bf16.vlgmr.msra.gmra.mxu1 %vm764_vm0, %v1011_v55 }
 0x1c7   : > { %v867_v6 = vadd.f32 %v3767_v29, %v866_v61  ;;  %3414 = vmatpush3.bf16.msra.mxu1 %v3436_v26  ;;  %v981_v7 = vmax.f32 %v875_v58, 0.0 }
 0x1c8   : > { %v3176_v8 = vpop.f32.mrf.mxu1  ;;  %3413 = vmatprep.subr.bf16.mxu1 %v3437_v27 }
 0x1c9   : > { %v979_v11 = vmax.f32 %v867_v6, 0.0  ;;  %v1013_v62 = vpack.c.bf16 %v981_v7, %v980_v16  ;;  %v888_v36 = vadd.f32 %v3176_v8, %v3767_v29 }
 0x1ca   : > { %v879_v21 = vpop.f32.mrf.mxu1 }
 0x1cb   : > { %v1012_v25 = vpack.c.bf16 %v979_v11, %v978_v9  ;;  %3415 = vmatpush3.bf16.msra.mxu1 %v3437_v27  ;;  %v880_v31 = vadd.f32 %v3767_v29, %v879_v21  ;;  %v984_v27 = vmax.f32 %v888_v36, 0.0 }
 0x1cc   : > { %v3177_v28 = vpop.f32.mrf.mxu1 }
 0x1cd   : > { %v891_v35 = vadd.f32 %v3177_v28, %v3767_v29  ;;  %3206 = vmatprep.mubr.msk.bf16.mxu1 %vm764_vm0, %v1012_v25  ;;  %v982_v41 = vmax.f32 %v880_v31, 0.0 }
 0x1ce   : > { %v882_v26 = vpop.f32.mrf.mxu1  ;;  %3207 = vmatmul.mubr.msk.bf16.gmra.mxu1 %vm764_vm0, %v1013_v62 }
 0x1cf   : > { %v883_v37 = vadd.f32 %v3767_v29, %v882_v26  ;;  %v985_v38 = vmax.f32 %v891_v35, 0.0 }
 0x1d0   : > { %v3180_v39 = vpop.f32.mrf.mxu1 }
 0x1d1   : > { %v983_v45 = vmax.f32 %v883_v37, 0.0  ;;  %v1015_v48 = vpack.c.bf16 %v985_v38, %v984_v27  ;;  %v904_v56 = vadd.f32 %v3180_v39, %v3767_v29 }
 0x1d2   : > { %v895_v46 = vpop.f32.mrf.mxu1 }
 0x1d3   : > { %v1014_v47 = vpack.c.bf16 %v983_v45, %v982_v41  ;;  %v896_v51 = vadd.f32 %v3767_v29, %v895_v46  ;;  %v988_v8 = vmax.f32 %v904_v56, 0.0 }
 0x1d4   : > { %v3181_v49 = vpop.f32.mrf.mxu1 }
 0x1d5   : > { %v907_v55 = vadd.f32 %v3181_v49, %v3767_v29  ;;  %3210 = vmatprep.mubr.msk.bf16.mxu1 %vm764_vm0, %v1014_v47  ;;  %v986_v6 = vmax.f32 %v896_v51, 0.0 }
 0x1d6   : > { %v898_v57 = vpop.f32.mrf.mxu1  ;;  %3211 = vmatmul.mubr.msk.bf16.gmra.mxu1 %vm764_vm0, %v1015_v48 }
 0x1d7   : > { %v899_v58 = vadd.f32 %v3767_v29, %v898_v57  ;;  %v989_v59 = vmax.f32 %v907_v55, 0.0 }
 0x1d8   : > { %v3184_v61 = vpop.f32.mrf.mxu1 }
 0x1d9   : > { %v987_v7 = vmax.f32 %v899_v58, 0.0  ;;  %v1017_v16 = vpack.c.bf16 %v989_v59, %v988_v8  ;;  %v920_v28 = vadd.f32 %v3184_v61, %v3767_v29 }
 0x1da   : > { %v911_v9 = vpop.f32.mrf.mxu1 }
 0x1db   : > { %v1016_v11 = vpack.c.bf16 %v987_v7, %v986_v6  ;;  %v912_v25 = vadd.f32 %v3767_v29, %v911_v9  ;;  %v992_v39 = vmax.f32 %v920_v28, 0.0 }
 0x1dc   : > { %v3185_v21 = vpop.f32.mrf.mxu1 }
 0x1dd   : > { %v923_v62 = vadd.f32 %v3185_v21, %v3767_v29  ;;  %3214 = vmatprep.mubr.msk.bf16.mxu1 %vm764_vm0, %v1016_v11  ;;  %v990_v37 = vmax.f32 %v912_v25, 0.0 }
 0x1de   : > { %v914_v31 = vpop.f32.mrf.mxu1  ;;  %3215 = vmatmul.mubr.msk.bf16.gmra.mxu1 %vm764_vm0, %v1017_v16 }
 0x1df   : > { %v915_v35 = vadd.f32 %v3767_v29, %v914_v31  ;;  %v993_v36 = vmax.f32 %v923_v62, 0.0 }
 0x1e0   : > { %v3188_v26 = vpop.f32.mrf.mxu1 }
 0x1e1   : > { %v991_v38 = vmax.f32 %v915_v35, 0.0  ;;  %v1019_v27 = vpack.c.bf16 %v993_v36, %v992_v39  ;;  %v936_v49 = vadd.f32 %v3188_v26, %v3767_v29 }
 0x1e2   : > { %v927_v41 = vpop.f32.mrf.mxu1 }
 0x1e3   : > { %v1018_v45 = vpack.c.bf16 %v991_v38, %v990_v37  ;;  %v928_v47 = vadd.f32 %v3767_v29, %v927_v41  ;;  %v996_v61 = vmax.f32 %v936_v49, 0.0 }
 0x1e4   : > { %v3189_v46 = vpop.f32.mrf.mxu1 }
 0x1e5   : > { %v939_v48 = vadd.f32 %v3189_v46, %v3767_v29  ;;  %3218 = vmatprep.mubr.msk.bf16.mxu1 %vm764_vm0, %v1018_v45  ;;  %v994_v58 = vmax.f32 %v928_v47, 0.0 }
 0x1e6   : > { %v930_v51 = vpop.f32.mrf.mxu1  ;;  %3219 = vmatmul.mubr.msk.bf16.gmra.mxu1 %vm764_vm0, %v1019_v27 }
 0x1e7   : > { %v931_v55 = vadd.f32 %v3767_v29, %v930_v51  ;;  %v997_v56 = vmax.f32 %v939_v48, 0.0 }
 0x1e8   : > { %v3192_v57 = vpop.f32.mrf.mxu1 }
 0x1e9   : > { %v995_v59 = vmax.f32 %v931_v55, 0.0  ;;  %v1021_v8 = vpack.c.bf16 %v997_v56, %v996_v61  ;;  %v952_v21 = vadd.f32 %v3192_v57, %v3767_v29  ;;  %v3820_v61 = vld [vmem:[%s4348_s6] ss:$0 sm:$0xff] }
 0x1ea   : > { %v943_v6 = vpop.f32.mrf.mxu1 }
 0x1eb   : > { %v1020_v7 = vpack.c.bf16 %v995_v59, %v994_v58  ;;  %v944_v11 = vadd.f32 %v3767_v29, %v943_v6  ;;  %v1000_v26 = vmax.f32 %v952_v21, 0.0 }
 0x1ec   : > { %v3193_v9 = vpop.f32.mrf.mxu1 }
 0x1ed   : > { %v955_v16 = vadd.f32 %v3193_v9, %v3767_v29  ;;  %3222 = vmatprep.mubr.msk.bf16.mxu1 %vm764_vm0, %v1020_v7  ;;  %v998_v35 = vmax.f32 %v944_v11, 0.0 }
 0x1ee   : > { %v946_v25 = vpop.f32.mrf.mxu1  ;;  %3223 = vmatmul.mubr.msk.bf16.gmra.mxu1 %vm764_vm0, %v1021_v8 }
 0x1ef   : > { %v947_v62 = vadd.f32 %v3767_v29, %v946_v25  ;;  %v1001_v28 = vmax.f32 %v955_v16, 0.0 }
 0x1f0   : > { %v3196_v31 = vpop.f32.mrf.mxu1 }
 0x1f1   : > { %v999_v36 = vmax.f32 %v947_v62, 0.0  ;;  %v1023_v39 = vpack.c.bf16 %v1001_v28, %v1000_v26  ;;  %v968_v46 = vadd.f32 %v3196_v31, %v3767_v29 }
 0x1f2   : > { %v959_v37 = vpop.f32.mrf.mxu1 }
 0x1f3   : > { %v1022_v38 = vpack.c.bf16 %v999_v36, %v998_v35  ;;  %v960_v45 = vadd.f32 %v3767_v29, %v959_v37  ;;  %v1004_v56 = vmax.f32 %v968_v46, 0.0 }
 0x1f4   : > { %v3197_v41 = vpop.f32.mrf.mxu1 }
 0x1f5   : > { %v971_v27 = vadd.f32 %v3197_v41, %v3767_v29  ;;  %3226 = vmatprep.mubr.msk.bf16.mxu1 %vm764_vm0, %v1022_v38  ;;  %v1002_v51 = vmax.f32 %v960_v45, 0.0 }
 0x1f6   : > { %v962_v47 = vpop.f32.mrf.mxu1  ;;  %3227 = vmatmul.mubr.msk.bf16.gmra.mxu1 %vm764_vm0, %v1023_v39 }
 0x1f7   : > { %v963_v48 = vadd.f32 %v3767_v29, %v962_v47  ;;  %v1005_v49 = vmax.f32 %v971_v27, 0.0 }
 0x1f9   : > { %v1003_v55 = vmax.f32 %v963_v48, 0.0  ;;  %v1025_v58 = vpack.c.bf16 %v1005_v49, %v1004_v56 }
 0x1fb   : > { %v1024_v57 = vpack.c.bf16 %v1003_v55, %v1002_v51 }
 0x1fd   : > { %3230 = vmatprep.mubr.msk.bf16.mxu1 %vm764_vm0, %v1024_v57 }
 0x1fe   : > { %3231 = vmatmul.mubr.msk.bf16.gmra.mxu1 %vm764_vm0, %v1025_v58 }
 0x286   : > { %v3204_v59 = vpop.f32.mrf.mxu1 }
 0x287   : > { %v1136_v29 = vadd.f32 %v3204_v59, %v3820_v61 }
 0x288   : > { %v1127_v6 = vpop.f32.mrf.mxu1 }
 0x289   : > { %v1128_v7 = vadd.f32 %v3820_v61, %v1127_v6  ;;  %v1256_v62 = vmax.f32 %v1136_v29, 0.0 }
 0x28a   : > { %v3205_v8 = vpop.f32.mrf.mxu1 }
 0x28b   : > { %v1139_v9 = vadd.f32 %v3205_v8, %v3820_v61  ;;  %v1254_v16 = vmax.f32 %v1128_v7, 0.0  ;;  %v3837_v39 = vadd.f32 %v1256_v62, %v3621_v3 }
 0x28c   : > { %v1130_v11 = vpop.f32.mrf.mxu1 }
 0x28d   : > { %v1257_v21 = vmax.f32 %v1139_v9, 0.0  ;;  %v1131_v25 = vadd.f32 %v3820_v61, %v1130_v11  ;;  %v3830_v26 = vadd.f32 %v1254_v16, %v3615_v1 }
 0x28e   : > { %v3208_v28 = vpop.f32.mrf.mxu1 }
 0x28f   : > { %v1255_v31 = vmax.f32 %v1131_v25, 0.0  ;;  %v3827_v35 = vadd.f32 %v1257_v21, %v3612_v63  ;;  %v1152_v41 = vadd.f32 %v3208_v28, %v3820_v61 }
 0x290   : > { %v1143_v36 = vpop.f32.mrf.mxu1 }
 0x291   : > { %v3833_v37 = vadd.f32 %v1255_v31, %v3618_v2  ;;  %v1144_v38 = vadd.f32 %v3820_v61, %v1143_v36  ;;  %v1324_v1 = vpack.c.bf16 %v3827_v35, %v3837_v39  ;;  %v1260_v3 = vmax.f32 %v1152_v41, 0.0 }
 0x292   : > { %v3209_v45 = vpop.f32.mrf.mxu1 }
 0x293   : > { %v1323_v27 = vpack.c.bf16 %v3833_v37, %v3830_v26  ;;  %v1155_v63 = vadd.f32 %v3209_v45, %v3820_v61  ;;  %v1258_v47 = vmax.f32 %v1144_v38, 0.0  ;;  %v3859_v6 = vadd.f32 %v1260_v3, %v3642_v14 }
 0x294   : > { %v1146_v46 = vpop.f32.mrf.mxu1 }
 0x295   : > { %v1261_v2 = vmax.f32 %v1155_v63, 0.0  ;;  %v1147_v48 = vadd.f32 %v3820_v61, %v1146_v46  ;;  %3238 = vmatprep.mubr.msk.bf16.mxu0 %vm764_vm0, %v1323_v27  ;;  %v3852_v57 = vadd.f32 %v1258_v47, %v3636_v12 }
 0x296   : > { %v3212_v49 = vpop.f32.mrf.mxu1  ;;  %3239 = vmatmul.mubr.msk.bf16.vlgmr.msra.gmra.mxu0 %vm764_vm0, %v1324_v1 }
 0x297   : > { %v1259_v51 = vmax.f32 %v1147_v48, 0.0  ;;  %v3849_v55 = vadd.f32 %v1261_v2, %v3633_v10  ;;  %v1168_v7 = vadd.f32 %v3212_v49, %v3820_v61 }
 0x298   : > { %v1159_v56 = vpop.f32.mrf.mxu1 }
 0x299   : > { %v3855_v58 = vadd.f32 %v1259_v51, %v3639_v13  ;;  %v1160_v59 = vadd.f32 %v3820_v61, %v1159_v56  ;;  %v1326_v12 = vpack.c.bf16 %v3849_v55, %v3859_v6  ;;  %v1264_v14 = vmax.f32 %v1168_v7, 0.0 }
 0x29a   : > { %v3213_v29 = vpop.f32.mrf.mxu1 }
 0x29b   : > { %v1325_v8 = vpack.c.bf16 %v3855_v58, %v3852_v57  ;;  %v1171_v10 = vadd.f32 %v3213_v29, %v3820_v61  ;;  %v1262_v11 = vmax.f32 %v1160_v59, 0.0  ;;  %v3881_v41 = vadd.f32 %v1264_v14, %v3660_v24 }
 0x29c   : > { %v1162_v9 = vpop.f32.mrf.mxu1 }
 0x29d   : > { %v1265_v13 = vmax.f32 %v1171_v10, 0.0  ;;  %v1163_v16 = vadd.f32 %v3820_v61, %v1162_v9  ;;  %3242 = vmatprep.mubr.msk.bf16.mxu0 %vm764_vm0, %v1325_v8  ;;  %v3874_v31 = vadd.f32 %v1262_v11, %v3654_v22 }
 0x29e   : > { %v3216_v21 = vpop.f32.mrf.mxu1  ;;  %3243 = vmatmul.mubr.msk.bf16.gmra.mxu0 %vm764_vm0, %v1326_v12 }
 0x29f   : > { %v1263_v25 = vmax.f32 %v1163_v16, 0.0  ;;  %v3871_v62 = vadd.f32 %v1265_v13, %v3651_v20  ;;  %v1184_v45 = vadd.f32 %v3216_v21, %v3820_v61 }
 0x2a0   : > { %v1175_v28 = vpop.f32.mrf.mxu1 }
 0x2a1   : > { %v3877_v36 = vadd.f32 %v1263_v25, %v3657_v23  ;;  %v1176_v38 = vadd.f32 %v3820_v61, %v1175_v28  ;;  %v1328_v22 = vpack.c.bf16 %v3871_v62, %v3881_v41  ;;  %v1268_v24 = vmax.f32 %v1184_v45, 0.0 }
 0x2a2   : > { %v3217_v27 = vpop.f32.mrf.mxu1 }
 0x2a3   : > { %v1327_v63 = vpack.c.bf16 %v3877_v36, %v3874_v31  ;;  %v1187_v20 = vadd.f32 %v3217_v27, %v3820_v61  ;;  %v1266_v46 = vmax.f32 %v1176_v38, 0.0  ;;  %v3903_v7 = vadd.f32 %v1268_v24, %v3678_v34 }
 0x2a4   : > { %v1178_v1 = vpop.f32.mrf.mxu1 }
 0x2a5   : > { %v1269_v23 = vmax.f32 %v1187_v20, 0.0  ;;  %v1179_v47 = vadd.f32 %v3820_v61, %v1178_v1  ;;  %3246 = vmatprep.mubr.msk.bf16.mxu0 %vm764_vm0, %v1327_v63  ;;  %v3896_v51 = vadd.f32 %v1266_v46, %v3672_v32 }
 0x2a6   : > { %v3220_v2 = vpop.f32.mrf.mxu1  ;;  %3247 = vmatmul.mubr.msk.bf16.gmra.mxu0 %vm764_vm0, %v1328_v22 }
 0x2a7   : > { %v1267_v48 = vmax.f32 %v1179_v47, 0.0  ;;  %v3893_v3 = vadd.f32 %v1269_v23, %v3669_v30  ;;  %v1200_v29 = vadd.f32 %v3220_v2, %v3820_v61 }
 0x2a8   : > { %v1191_v49 = vpop.f32.mrf.mxu1 }
 0x2a9   : > { %v3899_v56 = vadd.f32 %v1267_v48, %v3675_v33  ;;  %v1192_v59 = vadd.f32 %v3820_v61, %v1191_v49  ;;  %v1330_v32 = vpack.c.bf16 %v3893_v3, %v3903_v7  ;;  %v1272_v34 = vmax.f32 %v1200_v29, 0.0 }
 0x2aa   : > { %v3221_v8 = vpop.f32.mrf.mxu1 }
 0x2ab   : > { %v1329_v10 = vpack.c.bf16 %v3899_v56, %v3896_v51  ;;  %v1203_v30 = vadd.f32 %v3221_v8, %v3820_v61  ;;  %v1270_v9 = vmax.f32 %v1192_v59, 0.0  ;;  %v3925_v45 = vadd.f32 %v1272_v34, %v3696_v44 }
 0x2ac   : > { %v1194_v12 = vpop.f32.mrf.mxu1 }
 0x2ad   : > { %v1273_v33 = vmax.f32 %v1203_v30, 0.0  ;;  %v1195_v11 = vadd.f32 %v3820_v61, %v1194_v12  ;;  %3250 = vmatprep.mubr.msk.bf16.mxu0 %vm764_vm0, %v1329_v10  ;;  %v3918_v25 = vadd.f32 %v1270_v9, %v3690_v42 }
 0x2ae   : > { %v3224_v13 = vpop.f32.mrf.mxu1  ;;  %3251 = vmatmul.mubr.msk.bf16.gmra.mxu0 %vm764_vm0, %v1330_v32 }
 0x2af   : > { %v1271_v16 = vmax.f32 %v1195_v11, 0.0  ;;  %v3915_v14 = vadd.f32 %v1273_v33, %v3687_v40  ;;  %v1216_v27 = vadd.f32 %v3224_v13, %v3820_v61 }
 0x2b0   : > { %v1207_v21 = vpop.f32.mrf.mxu1 }
 0x2b1   : > { %v3921_v28 = vadd.f32 %v1271_v16, %v3693_v43  ;;  %v1208_v38 = vadd.f32 %v3820_v61, %v1207_v21  ;;  %v1332_v42 = vpack.c.bf16 %v3915_v14, %v3925_v45  ;;  %v1276_v44 = vmax.f32 %v1216_v27, 0.0 }
 0x2b2   : > { %v3225_v63 = vpop.f32.mrf.mxu1 }
 0x2b3   : > { %v1331_v20 = vpack.c.bf16 %v3921_v28, %v3918_v25  ;;  %v1219_v40 = vadd.f32 %v3225_v63, %v3820_v61  ;;  %v1274_v1 = vmax.f32 %v1208_v38, 0.0  ;;  %v3947_v29 = vadd.f32 %v1276_v44, %v3714_v54 }
 0x2b4   : > { %v1210_v22 = vpop.f32.mrf.mxu1 }
 0x2b5   : > { %v1277_v43 = vmax.f32 %v1219_v40, 0.0  ;;  %v1211_v46 = vadd.f32 %v3820_v61, %v1210_v22  ;;  %3254 = vmatprep.mubr.msk.bf16.mxu0 %vm764_vm0, %v1331_v20  ;;  %v3940_v48 = vadd.f32 %v1274_v1, %v3708_v52 }
 0x2b6   : > { %v3228_v23 = vpop.f32.mrf.mxu1  ;;  %3255 = vmatmul.mubr.msk.bf16.gmra.mxu0 %vm764_vm0, %v1332_v42 }
 0x2b7   : > { %v1275_v47 = vmax.f32 %v1211_v46, 0.0  ;;  %v3937_v24 = vadd.f32 %v1277_v43, %v3705_v50  ;;  %v1232_v8 = vadd.f32 %v3228_v23, %v3820_v61 }
 0x2b8   : > { %v1223_v2 = vpop.f32.mrf.mxu1 }
 0x2b9   : > { %v3943_v49 = vadd.f32 %v1275_v47, %v3711_v53  ;;  %v1224_v59 = vadd.f32 %v3820_v61, %v1223_v2  ;;  %v1334_v52 = vpack.c.bf16 %v3937_v24, %v3947_v29  ;;  %v1280_v54 = vmax.f32 %v1232_v8, 0.0 }
 0x2ba   : > { %v3229_v10 = vpop.f32.mrf.mxu1 }
 0x2bb   : > { %v1333_v30 = vpack.c.bf16 %v3943_v49, %v3940_v48  ;;  %v1235_v50 = vadd.f32 %v3229_v10, %v3820_v61  ;;  %v1278_v12 = vmax.f32 %v1224_v59, 0.0  ;;  %v3969_v27 = vadd.f32 %v1280_v54, %v3732_v5  ;;  %v4013_v10 = vld [vmem:[%s4346_s4 + $0x1] ss:$0 sm:$0xff] }
 0x2bc   : > { %v1226_v32 = vpop.f32.mrf.mxu1 }
 0x2bd   : > { %v1281_v53 = vmax.f32 %v1235_v50, 0.0  ;;  %v1227_v9 = vadd.f32 %v3820_v61, %v1226_v32  ;;  %3258 = vmatprep.mubr.msk.bf16.mxu0 %vm764_vm0, %v1333_v30  ;;  %v3962_v16 = vadd.f32 %v1278_v12, %v3726_v0 }
 0x2be   : > { %v3232_v33 = vpop.f32.mrf.mxu1  ;;  %3259 = vmatmul.mubr.msk.bf16.gmra.mxu0 %vm764_vm0, %v1334_v52 }
 0x2bf   : > { %v1279_v11 = vmax.f32 %v1227_v9, 0.0  ;;  %v3959_v34 = vadd.f32 %v1281_v53, %v3723_v60  ;;  %v1248_v63 = vadd.f32 %v3232_v33, %v3820_v61 }
 0x2c0   : > { %v1239_v13 = vpop.f32.mrf.mxu1 }
 0x2c1   : > { %v3965_v21 = vadd.f32 %v1279_v11, %v3729_v4  ;;  %v1240_v38 = vadd.f32 %v3820_v61, %v1239_v13  ;;  %v1336_v0 = vpack.c.bf16 %v3959_v34, %v3969_v27  ;;  %v1284_v5 = vmax.f32 %v1248_v63, 0.0 }
 0x2c2   : > { %v3233_v20 = vpop.f32.mrf.mxu1 }
 0x2c3   : > { %v1335_v40 = vpack.c.bf16 %v3965_v21, %v3962_v16  ;;  %v1251_v60 = vadd.f32 %v3233_v20, %v3820_v61  ;;  %v1282_v22 = vmax.f32 %v1240_v38, 0.0  ;;  %v3990_v47 = vadd.f32 %v1284_v5, %v3750_v19  ;;  %v3441_v19 = vld [vmem:[%s4349_s7] sm:$0xff]  }
 0x2c4   : > { %v1242_v42 = vpop.f32.mrf.mxu1 }
 0x2c5   : > { %v1285_v4 = vmax.f32 %v1251_v60, 0.0  ;;  %v1243_v1 = vadd.f32 %v3820_v61, %v1242_v42  ;;  %3262 = vmatprep.mubr.msk.bf16.mxu0 %vm764_vm0, %v1335_v40  ;;  %v3984_v44 = vadd.f32 %v1282_v22, %v3744_v17  ;;  %v3439_v17 = vld [vmem:[%s4347_s5 + $0x10] sm:$0xff]  }
 0x2c6   : > { %3263 = vmatmul.mubr.msk.bf16.gmra.mxu0 %vm764_vm0, %v1336_v0 }
 0x2c7   : > { %v1283_v43 = vmax.f32 %v1243_v1, 0.0  ;;  %v3981_v46 = vadd.f32 %v1285_v4, %v3741_v15  ;;  %v3438_v15 = vld [vmem:[%s4347_s5 + $0x18] sm:$0xff]  }
 0x2c8   : > { %3270 = vmatprep.subr.bf16.mxu1 %v3438_v15 }
 0x2c9   : > { %v3987_v23 = vadd.f32 %v1283_v43, %v3747_v18  ;;  %v1338_v2 = vpack.c.bf16 %v3981_v46, %v3990_v47  ;;  %v3440_v18 = vld [vmem:[%s4349_s7 + $0x8] sm:$0xff]  }
 0x2ca   : > { %3306 = vmatprep.subr.bf16.mxu0 %v3440_v18 }
 0x2cb   : > { %v1337_v61 = vpack.c.bf16 %v3987_v23, %v3984_v44  ;;  %3307 = vmatpush3.bf16.msra.mxu0 %v3440_v18 }
 0x2cc   : > { %3308 = vmatprep.subr.bf16.mxu0 %v3441_v19 }
 0x2cd   : > { %3266 = vmatprep.mubr.msk.bf16.mxu1 %vm764_vm0, %v1337_v61 }
 0x2ce   : > { %3267 = vmatmul.mubr.msk.bf16.vlgmr.msra.gmra.mxu1 %vm764_vm0, %v1338_v2 }
 0x2cf   : > { %3271 = vmatpush3.bf16.msra.mxu1 %v3438_v15  ;;  %3309 = vmatpush3.bf16.msra.mxu0 %v3441_v19 }
 0x2d0   : > { %3272 = vmatprep.subr.bf16.mxu1 %v3439_v17 }
 0x2d3   : > { %3273 = vmatpush3.bf16.msra.mxu1 %v3439_v17 }
 0x356   : > { %v3240_v59 = vpop.f32.mrf.mxu0 }
 0x357   : > { %v1450_v32 = vadd.f32 %v3240_v59, %v4013_v10 }
 0x358   : > { %v1441_v8 = vpop.f32.mrf.mxu0 }
 0x359   : > { %v1442_v50 = vadd.f32 %v4013_v10, %v1441_v8  ;;  %v1570_v13 = vmax.f32 %v1450_v32, 0.0 }
 0x35a   : > { %v3241_v30 = vpop.f32.mrf.mxu0 }
 0x35b   : > { %v1453_v52 = vadd.f32 %v3241_v30, %v4013_v10  ;;  %v1568_v33 = vmax.f32 %v1442_v50, 0.0 }
 0x35c   : > { %v1444_v12 = vpop.f32.mrf.mxu0 }
 0x35d   : > { %v1445_v53 = vadd.f32 %v4013_v10, %v1444_v12  ;;  %v1571_v9 = vmax.f32 %v1453_v52, 0.0 }
 0x35e   : > { %v3244_v54 = vpop.f32.mrf.mxu0 }
 0x35f   : > { %v1569_v11 = vmax.f32 %v1445_v53, 0.0  ;;  %v1606_v20 = vpack.c.bf16 %v1571_v9, %v1570_v13  ;;  %v1466_v42 = vadd.f32 %v3244_v54, %v4013_v10 }
 0x360   : > { %v1457_v38 = vpop.f32.mrf.mxu0 }
 0x361   : > { %v1605_v63 = vpack.c.bf16 %v1569_v11, %v1568_v33  ;;  %v1458_v60 = vadd.f32 %v4013_v10, %v1457_v38  ;;  %v1574_v2 = vmax.f32 %v1466_v42, 0.0 }
 0x362   : > { %v3245_v40 = vpop.f32.mrf.mxu0 }
 0x363   : > { %v1469_v0 = vadd.f32 %v3245_v40, %v4013_v10  ;;  %3274 = vmatprep.mubr.msk.bf16.mxu1 %vm764_vm0, %v1605_v63  ;;  %v1572_v43 = vmax.f32 %v1458_v60, 0.0 }
 0x364   : > { %v1460_v22 = vpop.f32.mrf.mxu0  ;;  %3275 = vmatmul.mubr.msk.bf16.vlgmr.msra.gmra.mxu1 %vm764_vm0, %v1606_v20 }
 0x365   : > { %v1461_v4 = vadd.f32 %v4013_v10, %v1460_v22  ;;  %v1575_v1 = vmax.f32 %v1469_v0, 0.0 }
 0x366   : > { %v3248_v5 = vpop.f32.mrf.mxu0 }
 0x367   : > { %v1573_v61 = vmax.f32 %v1461_v4, 0.0  ;;  %v1608_v18 = vpack.c.bf16 %v1575_v1, %v1574_v2  ;;  %v1482_v30 = vadd.f32 %v3248_v5, %v4013_v10 }
 0x368   : > { %v1473_v15 = vpop.f32.mrf.mxu0 }
 0x369   : > { %v1607_v17 = vpack.c.bf16 %v1573_v61, %v1572_v43  ;;  %v1474_v59 = vadd.f32 %v4013_v10, %v1473_v15  ;;  %v1578_v54 = vmax.f32 %v1482_v30, 0.0 }
 0x36a   : > { %v3249_v19 = vpop.f32.mrf.mxu0 }
 0x36b   : > { %v1485_v8 = vadd.f32 %v3249_v19, %v4013_v10  ;;  %3278 = vmatprep.mubr.msk.bf16.mxu1 %vm764_vm0, %v1607_v17  ;;  %v1576_v53 = vmax.f32 %v1474_v59, 0.0 }
 0x36c   : > { %v1476_v50 = vpop.f32.mrf.mxu0  ;;  %3279 = vmatmul.mubr.msk.bf16.gmra.mxu1 %vm764_vm0, %v1608_v18 }
 0x36d   : > { %v1477_v52 = vadd.f32 %v4013_v10, %v1476_v50  ;;  %v1579_v32 = vmax.f32 %v1485_v8, 0.0 }
 0x36e   : > { %v3252_v12 = vpop.f32.mrf.mxu0 }
 0x36f   : > { %v1577_v9 = vmax.f32 %v1477_v52, 0.0  ;;  %v1610_v13 = vpack.c.bf16 %v1579_v32, %v1578_v54  ;;  %v1498_v40 = vadd.f32 %v3252_v12, %v4013_v10 }
 0x370   : > { %v1489_v33 = vpop.f32.mrf.mxu0 }
 0x371   : > { %v1609_v11 = vpack.c.bf16 %v1577_v9, %v1576_v53  ;;  %v1490_v63 = vadd.f32 %v4013_v10, %v1489_v33  ;;  %v1582_v5 = vmax.f32 %v1498_v40, 0.0 }
 0x372   : > { %v3253_v38 = vpop.f32.mrf.mxu0 }
 0x373   : > { %v1501_v20 = vadd.f32 %v3253_v38, %v4013_v10  ;;  %3282 = vmatprep.mubr.msk.bf16.mxu1 %vm764_vm0, %v1609_v11  ;;  %v1580_v4 = vmax.f32 %v1490_v63, 0.0 }
 0x374   : > { %v1492_v60 = vpop.f32.mrf.mxu0  ;;  %3283 = vmatmul.mubr.msk.bf16.gmra.mxu1 %vm764_vm0, %v1610_v13 }
 0x375   : > { %v1493_v0 = vadd.f32 %v4013_v10, %v1492_v60  ;;  %v1583_v42 = vmax.f32 %v1501_v20, 0.0 }
 0x376   : > { %v3256_v22 = vpop.f32.mrf.mxu0 }
 0x377   : > { %v1581_v1 = vmax.f32 %v1493_v0, 0.0  ;;  %v1612_v2 = vpack.c.bf16 %v1583_v42, %v1582_v5  ;;  %v1514_v19 = vadd.f32 %v3256_v22, %v4013_v10 }
 0x378   : > { %v1505_v43 = vpop.f32.mrf.mxu0 }
 0x379   : > { %v1611_v61 = vpack.c.bf16 %v1581_v1, %v1580_v4  ;;  %v1506_v17 = vadd.f32 %v4013_v10, %v1505_v43  ;;  %v1586_v12 = vmax.f32 %v1514_v19, 0.0 }
 0x37a   : > { %v3257_v15 = vpop.f32.mrf.mxu0 }
 0x37b   : > { %v1517_v18 = vadd.f32 %v3257_v15, %v4013_v10  ;;  %3286 = vmatprep.mubr.msk.bf16.mxu1 %vm764_vm0, %v1611_v61  ;;  %v1584_v52 = vmax.f32 %v1506_v17, 0.0 }
 0x37c   : > { %v1508_v59 = vpop.f32.mrf.mxu0  ;;  %3287 = vmatmul.mubr.msk.bf16.gmra.mxu1 %vm764_vm0, %v1612_v2 }
 0x37d   : > { %v1509_v8 = vadd.f32 %v4013_v10, %v1508_v59  ;;  %v1587_v30 = vmax.f32 %v1517_v18, 0.0 }
 0x37e   : > { %v3260_v50 = vpop.f32.mrf.mxu0 }
 0x37f   : > { %v1585_v32 = vmax.f32 %v1509_v8, 0.0  ;;  %v1614_v54 = vpack.c.bf16 %v1587_v30, %v1586_v12  ;;  %v1530_v38 = vadd.f32 %v3260_v50, %v4013_v10 }
 0x380   : > { %v1521_v53 = vpop.f32.mrf.mxu0 }
 0x381   : > { %v1613_v9 = vpack.c.bf16 %v1585_v32, %v1584_v52  ;;  %v1522_v11 = vadd.f32 %v4013_v10, %v1521_v53  ;;  %v1590_v22 = vmax.f32 %v1530_v38, 0.0 }
 0x382   : > { %v3261_v33 = vpop.f32.mrf.mxu0 }
 0x383   : > { %v1533_v13 = vadd.f32 %v3261_v33, %v4013_v10  ;;  %3290 = vmatprep.mubr.msk.bf16.mxu1 %vm764_vm0, %v1613_v9  ;;  %v1588_v0 = vmax.f32 %v1522_v11, 0.0 }
 0x384   : > { %v1524_v63 = vpop.f32.mrf.mxu0  ;;  %3291 = vmatmul.mubr.msk.bf16.gmra.mxu1 %vm764_vm0, %v1614_v54 }
 0x385   : > { %v1525_v20 = vadd.f32 %v4013_v10, %v1524_v63  ;;  %v1591_v40 = vmax.f32 %v1533_v13, 0.0 }
 0x386   : > { %v3264_v60 = vpop.f32.mrf.mxu0 }
 0x387   : > { %v1589_v42 = vmax.f32 %v1525_v20, 0.0  ;;  %v1616_v5 = vpack.c.bf16 %v1591_v40, %v1590_v22  ;;  %v1546_v15 = vadd.f32 %v3264_v60, %v4013_v10  ;;  %v3443_v22 = vld [vmem:[%s4351_s9] sm:$0xff]  }
 0x388   : > { %v1537_v4 = vpop.f32.mrf.mxu0 }
 0x389   : > { %v1615_v1 = vpack.c.bf16 %v1589_v42, %v1588_v0  ;;  %v1538_v61 = vadd.f32 %v4013_v10, %v1537_v4  ;;  %v1594_v50 = vmax.f32 %v1546_v15, 0.0  ;;  %v3442_v42 = vld [vmem:[%s4351_s9 + $0x8] sm:$0xff]   ;;  %v4072_v4 = vld [vmem:[%s4348_s6 + $0x1] ss:$0 sm:$0xff] }
 0x38a   : > { %v3265_v43 = vpop.f32.mrf.mxu0  ;;  %3342 = vmatprep.subr.bf16.mxu1 %v3442_v42 }
 0x38b   : > { %v1549_v2 = vadd.f32 %v3265_v43, %v4013_v10  ;;  %3294 = vmatprep.mubr.msk.bf16.mxu1 %vm764_vm0, %v1615_v1  ;;  %v1592_v8 = vmax.f32 %v1538_v61, 0.0  ;;  %3343 = vmatpush3.bf16.msra.mxu1 %v3442_v42 }
 0x38c   : > { %v1540_v17 = vpop.f32.mrf.mxu0  ;;  %3295 = vmatmul.mubr.msk.bf16.gmra.mxu1 %vm764_vm0, %v1616_v5  ;;  %3344 = vmatprep.subr.bf16.mxu1 %v3443_v22 }
 0x38d   : > { %v1541_v18 = vadd.f32 %v4013_v10, %v1540_v17  ;;  %v1595_v19 = vmax.f32 %v1549_v2, 0.0 }
 0x38e   : > { %v3268_v59 = vpop.f32.mrf.mxu1 }
 0x38f   : > { %v1593_v30 = vmax.f32 %v1541_v18, 0.0  ;;  %v1618_v12 = vpack.c.bf16 %v1595_v19, %v1594_v50  ;;  %v1562_v33 = vadd.f32 %v3268_v59, %v4013_v10  ;;  %3345 = vmatpush3.bf16.msra.mxu1 %v3443_v22 }
 0x390   : > { %v1553_v52 = vpop.f32.mrf.mxu1 }
 0x391   : > { %v1617_v32 = vpack.c.bf16 %v1593_v30, %v1592_v8  ;;  %v1554_v9 = vadd.f32 %v4013_v10, %v1553_v52  ;;  %v1598_v40 = vmax.f32 %v1562_v33, 0.0 }
 0x392   : > { %v3269_v53 = vpop.f32.mrf.mxu1 }
 0x393   : > { %v1565_v54 = vadd.f32 %v3269_v53, %v4013_v10  ;;  %3298 = vmatprep.mubr.msk.bf16.mxu1 %vm764_vm0, %v1617_v32  ;;  %v1596_v63 = vmax.f32 %v1554_v9, 0.0 }
 0x394   : > { %v1556_v11 = vpop.f32.mrf.mxu1  ;;  %3299 = vmatmul.mubr.msk.bf16.gmra.mxu1 %vm764_vm0, %v1618_v12 }
 0x395   : > { %v1557_v13 = vadd.f32 %v4013_v10, %v1556_v11  ;;  %v1599_v38 = vmax.f32 %v1565_v54, 0.0 }
 0x397   : > { %v1597_v20 = vmax.f32 %v1557_v13, 0.0  ;;  %v1620_v0 = vpack.c.bf16 %v1599_v38, %v1598_v40 }
 0x399   : > { %v1619_v60 = vpack.c.bf16 %v1597_v20, %v1596_v63 }
 0x39b   : > { %3302 = vmatprep.mubr.msk.bf16.mxu1 %vm764_vm0, %v1619_v60 }
 0x39c   : > { %3303 = vmatmul.mubr.msk.bf16.gmra.mxu1 %vm764_vm0, %v1620_v0 }
 0x424   : > { %v3276_v10 = vpop.f32.mrf.mxu1 }
 0x425   : > { %v1732_v43 = vadd.f32 %v3276_v10, %v4072_v4 }
 0x426   : > { %v1723_v1 = vpop.f32.mrf.mxu1 }
 0x427   : > { %v1724_v5 = vadd.f32 %v4072_v4, %v1723_v1  ;;  %v1852_v59 = vmax.f32 %v1732_v43, 0.0 }
 0x428   : > { %v3277_v61 = vpop.f32.mrf.mxu1 }
 0x429   : > { %v1735_v2 = vadd.f32 %v3277_v61, %v4072_v4  ;;  %v1850_v17 = vmax.f32 %v1724_v5, 0.0  ;;  %v1884_v9 = vadd.f32 %v1852_v59, %v3837_v39 }
 0x42a   : > { %v1726_v15 = vpop.f32.mrf.mxu1 }
 0x42b   : > { %v1853_v18 = vmax.f32 %v1735_v2, 0.0  ;;  %v1727_v19 = vadd.f32 %v4072_v4, %v1726_v15  ;;  %v1882_v32 = vadd.f32 %v1850_v17, %v3830_v26 }
 0x42c   : > { %v3280_v8 = vpop.f32.mrf.mxu1 }
 0x42d   : > { %v1851_v30 = vmax.f32 %v1727_v19, 0.0  ;;  %v1885_v50 = vadd.f32 %v1853_v18, %v3827_v35  ;;  %v1748_v54 = vadd.f32 %v3280_v8, %v4072_v4 }
 0x42e   : > { %v1739_v52 = vpop.f32.mrf.mxu1 }
 0x42f   : > { %v1883_v12 = vadd.f32 %v1851_v30, %v3833_v37  ;;  %v1740_v53 = vadd.f32 %v4072_v4, %v1739_v52  ;;  %v1919_v38 = vpack.c.bf16 %v1885_v50, %v1884_v9  ;;  %v1856_v26 = vmax.f32 %v1748_v54, 0.0 }
 0x430   : > { %v3281_v33 = vpop.f32.mrf.mxu1 }
 0x431   : > { %v1918_v11 = vpack.c.bf16 %v1883_v12, %v1882_v32  ;;  %v1751_v13 = vadd.f32 %v3281_v33, %v4072_v4  ;;  %v1854_v20 = vmax.f32 %v1740_v53, 0.0  ;;  %v1888_v1 = vadd.f32 %v1856_v26, %v3859_v6 }
 0x432   : > { %v1742_v63 = vpop.f32.mrf.mxu1 }
 0x433   : > { %v1857_v40 = vmax.f32 %v1751_v13, 0.0  ;;  %v1743_v35 = vadd.f32 %v4072_v4, %v1742_v63  ;;  %3310 = vmatprep.mubr.msk.bf16.mxu0 %vm764_vm0, %v1918_v11  ;;  %v1886_v42 = vadd.f32 %v1854_v20, %v3852_v57 }
 0x434   : > { %v3284_v37 = vpop.f32.mrf.mxu1  ;;  %3311 = vmatmul.mubr.msk.bf16.vlgmr.msra.gmra.mxu0 %vm764_vm0, %v1919_v38 }
 0x435   : > { %v1855_v60 = vmax.f32 %v1743_v35, 0.0  ;;  %v1889_v39 = vadd.f32 %v1857_v40, %v3849_v55  ;;  %v1764_v5 = vadd.f32 %v3284_v37, %v4072_v4 }
 0x436   : > { %v1755_v0 = vpop.f32.mrf.mxu1 }
 0x437   : > { %v1887_v22 = vadd.f32 %v1855_v60, %v3855_v58  ;;  %v1756_v10 = vadd.f32 %v4072_v4, %v1755_v0  ;;  %v1921_v15 = vpack.c.bf16 %v1889_v39, %v1888_v1  ;;  %v1860_v57 = vmax.f32 %v1764_v5, 0.0 }
 0x438   : > { %v3285_v43 = vpop.f32.mrf.mxu1 }
 0x439   : > { %v1920_v61 = vpack.c.bf16 %v1887_v22, %v1886_v42  ;;  %v1767_v2 = vadd.f32 %v3285_v43, %v4072_v4  ;;  %v1858_v18 = vmax.f32 %v1756_v10, 0.0  ;;  %v1892_v32 = vadd.f32 %v1860_v57, %v3881_v41 }
 0x43a   : > { %v1758_v17 = vpop.f32.mrf.mxu1 }
 0x43b   : > { %v1861_v19 = vmax.f32 %v1767_v2, 0.0  ;;  %v1759_v55 = vadd.f32 %v4072_v4, %v1758_v17  ;;  %3314 = vmatprep.mubr.msk.bf16.mxu0 %vm764_vm0, %v1920_v61  ;;  %v1890_v30 = vadd.f32 %v1858_v18, %v3874_v31 }
 0x43c   : > { %v3288_v58 = vpop.f32.mrf.mxu1  ;;  %3315 = vmatmul.mubr.msk.bf16.gmra.mxu0 %vm764_vm0, %v1921_v15 }
 0x43d   : > { %v1859_v59 = vmax.f32 %v1759_v55, 0.0  ;;  %v1893_v6 = vadd.f32 %v1861_v19, %v3871_v62  ;;  %v1780_v12 = vadd.f32 %v3288_v58, %v4072_v4 }
 0x43e   : > { %v1771_v8 = vpop.f32.mrf.mxu1 }
 0x43f   : > { %v1891_v50 = vadd.f32 %v1859_v59, %v3877_v36  ;;  %v1772_v52 = vadd.f32 %v4072_v4, %v1771_v8  ;;  %v1923_v33 = vpack.c.bf16 %v1893_v6, %v1892_v32  ;;  %v1864_v31 = vmax.f32 %v1780_v12, 0.0 }
 0x440   : > { %v3289_v53 = vpop.f32.mrf.mxu1 }
 0x441   : > { %v1922_v9 = vpack.c.bf16 %v1891_v50, %v1890_v30  ;;  %v1783_v54 = vadd.f32 %v3289_v53, %v4072_v4  ;;  %v1862_v13 = vmax.f32 %v1772_v52, 0.0  ;;  %v1896_v37 = vadd.f32 %v1864_v31, %v3903_v7 }
 0x442   : > { %v1774_v11 = vpop.f32.mrf.mxu1 }
 0x443   : > { %v1865_v38 = vmax.f32 %v1783_v54, 0.0  ;;  %v1775_v62 = vadd.f32 %v4072_v4, %v1774_v11  ;;  %3318 = vmatprep.mubr.msk.bf16.mxu0 %vm764_vm0, %v1922_v9  ;;  %v1894_v40 = vadd.f32 %v1862_v13, %v3896_v51 }
 0x444   : > { %v3292_v36 = vpop.f32.mrf.mxu1  ;;  %3319 = vmatmul.mubr.msk.bf16.gmra.mxu0 %vm764_vm0, %v1923_v33 }
 0x445   : > { %v1863_v63 = vmax.f32 %v1775_v62, 0.0  ;;  %v1897_v41 = vadd.f32 %v1865_v38, %v3893_v3  ;;  %v1796_v60 = vadd.f32 %v3292_v36, %v4072_v4 }
 0x446   : > { %v1787_v20 = vpop.f32.mrf.mxu1 }
 0x447   : > { %v1895_v35 = vadd.f32 %v1863_v63, %v3899_v56  ;;  %v1788_v26 = vadd.f32 %v4072_v4, %v1787_v20  ;;  %v1925_v22 = vpack.c.bf16 %v1897_v41, %v1896_v37  ;;  %v1868_v51 = vmax.f32 %v1796_v60, 0.0 }
 0x448   : > { %v3293_v39 = vpop.f32.mrf.mxu1 }
 0x449   : > { %v1924_v0 = vpack.c.bf16 %v1895_v35, %v1894_v40  ;;  %v1799_v42 = vadd.f32 %v3293_v39, %v4072_v4  ;;  %v1866_v1 = vmax.f32 %v1788_v26, 0.0  ;;  %v1900_v18 = vadd.f32 %v1868_v51, %v3925_v45 }
 0x44a   : > { %v1790_v10 = vpop.f32.mrf.mxu1 }
 0x44b   : > { %v1869_v5 = vmax.f32 %v1799_v42, 0.0  ;;  %v1791_v3 = vadd.f32 %v4072_v4, %v1790_v10  ;;  %3322 = vmatprep.mubr.msk.bf16.mxu0 %vm764_vm0, %v1924_v0  ;;  %v1898_v2 = vadd.f32 %v1866_v1, %v3918_v25 }
 0x44c   : > { %v3296_v56 = vpop.f32.mrf.mxu1  ;;  %3323 = vmatmul.mubr.msk.bf16.gmra.mxu0 %vm764_vm0, %v1925_v22 }
 0x44d   : > { %v1867_v43 = vmax.f32 %v1791_v3, 0.0  ;;  %v1901_v7 = vadd.f32 %v1869_v5, %v3915_v14  ;;  %v1812_v19 = vadd.f32 %v3296_v56, %v4072_v4 }
 0x44e   : > { %v1803_v61 = vpop.f32.mrf.mxu1 }
 0x44f   : > { %v1899_v15 = vadd.f32 %v1867_v43, %v3921_v28  ;;  %v1804_v17 = vadd.f32 %v4072_v4, %v1803_v61  ;;  %v1927_v59 = vpack.c.bf16 %v1901_v7, %v1900_v18  ;;  %v1872_v25 = vmax.f32 %v1812_v19, 0.0 }
 0x450   : > { %v3297_v55 = vpop.f32.mrf.mxu1 }
 0x451   : > { %v1926_v57 = vpack.c.bf16 %v1899_v15, %v1898_v2  ;;  %v1815_v58 = vadd.f32 %v3297_v55, %v4072_v4  ;;  %v1870_v8 = vmax.f32 %v1804_v17, 0.0  ;;  %v1904_v9 = vadd.f32 %v1872_v25, %v3947_v29 }
 0x452   : > { %v1806_v6 = vpop.f32.mrf.mxu1 }
 0x453   : > { %v1873_v30 = vmax.f32 %v1815_v58, 0.0  ;;  %v1807_v14 = vadd.f32 %v4072_v4, %v1806_v6  ;;  %3326 = vmatprep.mubr.msk.bf16.mxu0 %vm764_vm0, %v1926_v57  ;;  %v1902_v32 = vadd.f32 %v1870_v8, %v3940_v48 }
 0x454   : > { %v3300_v28 = vpop.f32.mrf.mxu1  ;;  %3327 = vmatmul.mubr.msk.bf16.gmra.mxu0 %vm764_vm0, %v1927_v59 }
 0x455   : > { %v1871_v50 = vmax.f32 %v1807_v14, 0.0  ;;  %v1905_v45 = vadd.f32 %v1873_v30, %v3937_v24  ;;  %v1828_v54 = vadd.f32 %v3300_v28, %v4072_v4 }
 0x456   : > { %v1819_v52 = vpop.f32.mrf.mxu1 }
 0x457   : > { %v1903_v12 = vadd.f32 %v1871_v50, %v3943_v49  ;;  %v1820_v53 = vadd.f32 %v4072_v4, %v1819_v52  ;;  %v1929_v38 = vpack.c.bf16 %v1905_v45, %v1904_v9  ;;  %v1876_v48 = vmax.f32 %v1828_v54, 0.0 }
 0x458   : > { %v3301_v33 = vpop.f32.mrf.mxu1 }
 0x459   : > { %v1928_v11 = vpack.c.bf16 %v1903_v12, %v1902_v32  ;;  %v1831_v13 = vadd.f32 %v3301_v33, %v4072_v4  ;;  %v1874_v31 = vmax.f32 %v1820_v53, 0.0  ;;  %v1908_v26 = vadd.f32 %v1876_v48, %v3969_v27 }
 0x45a   : > { %v1822_v62 = vpop.f32.mrf.mxu1 }
 0x45b   : > { %v1877_v36 = vmax.f32 %v1831_v13, 0.0  ;;  %v1823_v24 = vadd.f32 %v4072_v4, %v1822_v62  ;;  %3330 = vmatprep.mubr.msk.bf16.mxu0 %vm764_vm0, %v1928_v11  ;;  %v1906_v20 = vadd.f32 %v1874_v31, %v3962_v16 }
 0x45c   : > { %v3304_v49 = vpop.f32.mrf.mxu1  ;;  %3331 = vmatmul.mubr.msk.bf16.gmra.mxu0 %vm764_vm0, %v1929_v38 }
 0x45d   : > { %v1875_v63 = vmax.f32 %v1823_v24, 0.0  ;;  %v1909_v29 = vadd.f32 %v1877_v36, %v3959_v34  ;;  %v1844_v37 = vadd.f32 %v3304_v49, %v4072_v4 }
 0x45e   : > { %v1835_v41 = vpop.f32.mrf.mxu1 }
 0x45f   : > { %v1907_v40 = vadd.f32 %v1875_v63, %v3965_v21  ;;  %v1836_v35 = vadd.f32 %v4072_v4, %v1835_v41  ;;  %v1931_v42 = vpack.c.bf16 %v1909_v29, %v1908_v26  ;;  %v1880_v16 = vmax.f32 %v1844_v37, 0.0 }
 0x460   : > { %v3305_v60 = vpop.f32.mrf.mxu1 }
 0x461   : > { %v1930_v39 = vpack.c.bf16 %v1907_v40, %v1906_v20  ;;  %v1847_v0 = vadd.f32 %v3305_v60, %v4072_v4  ;;  %v1878_v10 = vmax.f32 %v1836_v35, 0.0  ;;  %v1912_v51 = vadd.f32 %v1880_v16, %v3990_v47 }
 0x462   : > { %v1838_v22 = vpop.f32.mrf.mxu1 }
 0x463   : > { %v1881_v1 = vmax.f32 %v1847_v0, 0.0  ;;  %v1839_v34 = vadd.f32 %v4072_v4, %v1838_v22  ;;  %3334 = vmatprep.mubr.msk.bf16.mxu0 %vm764_vm0, %v1930_v39  ;;  %v1910_v5 = vadd.f32 %v1878_v10, %v3984_v44  ;;  %v3444_v4 = vld [vmem:[%s4353_s11] sm:$0xff]  }
 0x464   : > { %3335 = vmatmul.mubr.msk.bf16.gmra.mxu0 %vm764_vm0, %v1931_v42  ;;  %3378 = vmatprep.subr.bf16.mxu0 %v3444_v4  ;;  %v4160_v44 = vld [vmem:[%s4350_s8] ss:$0 sm:$0xff] }
 0x465   : > { %v1879_v21 = vmax.f32 %v1839_v34, 0.0  ;;  %v1913_v27 = vadd.f32 %v1881_v1, %v3981_v46  ;;  %3379 = vmatpush3.bf16.msra.mxu0 %v3444_v4 }
 0x467   : > { %v1911_v3 = vadd.f32 %v1879_v21, %v3987_v23  ;;  %v1933_v43 = vpack.c.bf16 %v1913_v27, %v1912_v51 }
 0x469   : > { %v1932_v56 = vpack.c.bf16 %v1911_v3, %v1910_v5 }
 0x46b   : > { %3338 = vmatprep.mubr.msk.bf16.mxu0 %vm764_vm0, %v1932_v56 }
 0x46c   : > { %3339 = vmatmul.mubr.msk.bf16.gmra.mxu0 %vm764_vm0, %v1933_v43 }
 0x4f4   : > { %v3312_v7 = vpop.f32.mrf.mxu0 }
 0x4f5   : > { %v2044_v2 = vadd.f32 %v3312_v7, %v4160_v44 }
 0x4f6   : > { %v2035_v46 = vpop.f32.mrf.mxu0 }
 0x4f7   : > { %v2036_v47 = vadd.f32 %v4160_v44, %v2035_v46  ;;  %v2164_v58 = vmax.f32 %v2044_v2, 0.0 }
 0x4f8   : > { %v3313_v23 = vpop.f32.mrf.mxu0 }
 0x4f9   : > { %v2047_v61 = vadd.f32 %v3313_v23, %v4160_v44  ;;  %v2162_v55 = vmax.f32 %v2036_v47, 0.0 }
 0x4fa   : > { %v2038_v15 = vpop.f32.mrf.mxu0 }
 0x4fb   : > { %v2039_v17 = vadd.f32 %v4160_v44, %v2038_v15  ;;  %v2165_v18 = vmax.f32 %v2047_v61, 0.0 }
 0x4fc   : > { %v3316_v19 = vpop.f32.mrf.mxu0 }
 0x4fd   : > { %v2163_v57 = vmax.f32 %v2039_v17, 0.0  ;;  %v2199_v8 = vpack.c.bf16 %v2165_v18, %v2164_v58  ;;  %v2060_v28 = vadd.f32 %v3316_v19, %v4160_v44 }
 0x4fe   : > { %v2051_v59 = vpop.f32.mrf.mxu0 }
 0x4ff   : > { %v2198_v6 = vpack.c.bf16 %v2163_v57, %v2162_v55  ;;  %v2052_v14 = vadd.f32 %v4160_v44, %v2051_v59  ;;  %v2168_v9 = vmax.f32 %v2060_v28, 0.0 }
 0x500   : > { %v3317_v30 = vpop.f32.mrf.mxu0 }
 0x501   : > { %v2063_v25 = vadd.f32 %v3317_v30, %v4160_v44  ;;  %3346 = vmatprep.mubr.msk.bf16.mxu1 %vm764_vm0, %v2198_v6  ;;  %v2166_v12 = vmax.f32 %v2052_v14, 0.0 }
 0x502   : > { %v2054_v50 = vpop.f32.mrf.mxu0  ;;  %3347 = vmatmul.mubr.msk.bf16.vlgmr.msra.gmra.mxu1 %vm764_vm0, %v2199_v8 }
 0x503   : > { %v2055_v45 = vadd.f32 %v4160_v44, %v2054_v50  ;;  %v2169_v52 = vmax.f32 %v2063_v25, 0.0 }
 0x504   : > { %v3320_v32 = vpop.f32.mrf.mxu0 }
 0x505   : > { %v2167_v53 = vmax.f32 %v2055_v45, 0.0  ;;  %v2201_v11 = vpack.c.bf16 %v2169_v52, %v2168_v9  ;;  %v2076_v31 = vadd.f32 %v3320_v32, %v4160_v44 }
 0x506   : > { %v2067_v54 = vpop.f32.mrf.mxu0 }
 0x507   : > { %v2200_v33 = vpack.c.bf16 %v2167_v53, %v2166_v12  ;;  %v2068_v38 = vadd.f32 %v4160_v44, %v2067_v54  ;;  %v2172_v41 = vmax.f32 %v2076_v31, 0.0 }
 0x508   : > { %v3321_v13 = vpop.f32.mrf.mxu0 }
 0x509   : > { %v2079_v62 = vadd.f32 %v3321_v13, %v4160_v44  ;;  %3350 = vmatprep.mubr.msk.bf16.mxu1 %vm764_vm0, %v2200_v33  ;;  %v2170_v63 = vmax.f32 %v2068_v38, 0.0 }
 0x50a   : > { %v2070_v36 = vpop.f32.mrf.mxu0  ;;  %3351 = vmatmul.mubr.msk.bf16.gmra.mxu1 %vm764_vm0, %v2201_v11 }
 0x50b   : > { %v2071_v24 = vadd.f32 %v4160_v44, %v2070_v36  ;;  %v2173_v48 = vmax.f32 %v2079_v62, 0.0 }
 0x50c   : > { %v3324_v49 = vpop.f32.mrf.mxu0 }
 0x50d   : > { %v2171_v29 = vmax.f32 %v2071_v24, 0.0  ;;  %v2203_v35 = vpack.c.bf16 %v2173_v48, %v2172_v41  ;;  %v2092_v39 = vadd.f32 %v3324_v49, %v4160_v44 }
 0x50e   : > { %v2083_v20 = vpop.f32.mrf.mxu0 }
 0x50f   : > { %v2202_v40 = vpack.c.bf16 %v2171_v29, %v2170_v63  ;;  %v2084_v37 = vadd.f32 %v4160_v44, %v2083_v20  ;;  %v2176_v16 = vmax.f32 %v2092_v39, 0.0 }
 0x510   : > { %v3325_v26 = vpop.f32.mrf.mxu0 }
 0x511   : > { %v2095_v60 = vadd.f32 %v3325_v26, %v4160_v44  ;;  %3354 = vmatprep.mubr.msk.bf16.mxu1 %vm764_vm0, %v2202_v40  ;;  %v2174_v1 = vmax.f32 %v2084_v37, 0.0 }
 0x512   : > { %v2086_v0 = vpop.f32.mrf.mxu0  ;;  %3355 = vmatmul.mubr.msk.bf16.gmra.mxu1 %vm764_vm0, %v2203_v35 }
 0x513   : > { %v2087_v42 = vadd.f32 %v4160_v44, %v2086_v0  ;;  %v2177_v22 = vmax.f32 %v2095_v60, 0.0 }
 0x514   : > { %v3328_v10 = vpop.f32.mrf.mxu0 }
 0x515   : > { %v2175_v34 = vmax.f32 %v2087_v42, 0.0  ;;  %v2205_v5 = vpack.c.bf16 %v2177_v22, %v2176_v16  ;;  %v2108_v43 = vadd.f32 %v3328_v10, %v4160_v44  ;;  %v4213_v10 = vld [vmem:[%s4352_s10] ss:$0 sm:$0xff] }
 0x516   : > { %v2099_v21 = vpop.f32.mrf.mxu0 }
 0x517   : > { %v2204_v27 = vpack.c.bf16 %v2175_v34, %v2174_v1  ;;  %v2100_v51 = vadd.f32 %v4160_v44, %v2099_v21  ;;  %v2180_v2 = vmax.f32 %v2108_v43, 0.0 }
 0x518   : > { %v3329_v3 = vpop.f32.mrf.mxu0 }
 0x519   : > { %v2111_v56 = vadd.f32 %v3329_v3, %v4160_v44  ;;  %3358 = vmatprep.mubr.msk.bf16.mxu1 %vm764_vm0, %v2204_v27  ;;  %v2178_v47 = vmax.f32 %v2100_v51, 0.0 }
 0x51a   : > { %v2102_v4 = vpop.f32.mrf.mxu0  ;;  %3359 = vmatmul.mubr.msk.bf16.gmra.mxu1 %vm764_vm0, %v2205_v5 }
 0x51b   : > { %v2103_v7 = vadd.f32 %v4160_v44, %v2102_v4  ;;  %v2181_v46 = vmax.f32 %v2111_v56, 0.0 }
 0x51c   : > { %v3332_v23 = vpop.f32.mrf.mxu0 }
 0x51d   : > { %v2179_v61 = vmax.f32 %v2103_v7, 0.0  ;;  %v2207_v18 = vpack.c.bf16 %v2181_v46, %v2180_v2  ;;  %v2124_v58 = vadd.f32 %v3332_v23, %v4160_v44 }
 0x51e   : > { %v2115_v15 = vpop.f32.mrf.mxu0 }
 0x51f   : > { %v2206_v17 = vpack.c.bf16 %v2179_v61, %v2178_v47  ;;  %v2116_v55 = vadd.f32 %v4160_v44, %v2115_v15  ;;  %v2184_v28 = vmax.f32 %v2124_v58, 0.0 }
 0x520   : > { %v3333_v19 = vpop.f32.mrf.mxu0 }
 0x521   : > { %v2127_v57 = vadd.f32 %v3333_v19, %v4160_v44  ;;  %3362 = vmatprep.mubr.msk.bf16.mxu1 %vm764_vm0, %v2206_v17  ;;  %v2182_v14 = vmax.f32 %v2116_v55, 0.0 }
 0x522   : > { %v2118_v59 = vpop.f32.mrf.mxu0  ;;  %3363 = vmatmul.mubr.msk.bf16.gmra.mxu1 %vm764_vm0, %v2207_v18 }
 0x523   : > { %v2119_v6 = vadd.f32 %v4160_v44, %v2118_v59  ;;  %v2185_v8 = vmax.f32 %v2127_v57, 0.0 }
 0x524   : > { %v3336_v30 = vpop.f32.mrf.mxu0 }
 0x525   : > { %v2183_v25 = vmax.f32 %v2119_v6, 0.0  ;;  %v2209_v52 = vpack.c.bf16 %v2185_v8, %v2184_v28  ;;  %v2140_v9 = vadd.f32 %v3336_v30, %v4160_v44 }
 0x526   : > { %v2131_v50 = vpop.f32.mrf.mxu0 }
 0x527   : > { %v2208_v45 = vpack.c.bf16 %v2183_v25, %v2182_v14  ;;  %v2132_v12 = vadd.f32 %v4160_v44, %v2131_v50  ;;  %v2188_v31 = vmax.f32 %v2140_v9, 0.0 }
 0x528   : > { %v3337_v32 = vpop.f32.mrf.mxu0 }
 0x529   : > { %v2143_v53 = vadd.f32 %v3337_v32, %v4160_v44  ;;  %3366 = vmatprep.mubr.msk.bf16.mxu1 %vm764_vm0, %v2208_v45  ;;  %v2186_v38 = vmax.f32 %v2132_v12, 0.0 }
 0x52a   : > { %v2134_v54 = vpop.f32.mrf.mxu0  ;;  %3367 = vmatmul.mubr.msk.bf16.gmra.mxu1 %vm764_vm0, %v2209_v52 }
 0x52b   : > { %v2135_v33 = vadd.f32 %v4160_v44, %v2134_v54  ;;  %v2189_v11 = vmax.f32 %v2143_v53, 0.0 }
 0x52c   : > { %v3340_v13 = vpop.f32.mrf.mxu0 }
 0x52d   : > { %v2187_v62 = vmax.f32 %v2135_v33, 0.0  ;;  %v2211_v48 = vpack.c.bf16 %v2189_v11, %v2188_v31  ;;  %v2156_v41 = vadd.f32 %v3340_v13, %v4160_v44 }
 0x52e   : > { %v2147_v36 = vpop.f32.mrf.mxu0 }
 0x52f   : > { %v2210_v24 = vpack.c.bf16 %v2187_v62, %v2186_v38  ;;  %v2148_v63 = vadd.f32 %v4160_v44, %v2147_v36  ;;  %v2192_v60 = vmax.f32 %v2156_v41, 0.0 }
 0x530   : > { %v3341_v49 = vpop.f32.mrf.mxu0 }
 0x531   : > { %v2159_v29 = vadd.f32 %v3341_v49, %v4160_v44  ;;  %3370 = vmatprep.mubr.msk.bf16.mxu1 %vm764_vm0, %v2210_v24  ;;  %v2190_v26 = vmax.f32 %v2148_v63, 0.0 }
 0x532   : > { %v2150_v20 = vpop.f32.mrf.mxu0  ;;  %3371 = vmatmul.mubr.msk.bf16.gmra.mxu1 %vm764_vm0, %v2211_v48 }
 0x533   : > { %v2151_v40 = vadd.f32 %v4160_v44, %v2150_v20  ;;  %v2193_v35 = vmax.f32 %v2159_v29, 0.0 }
 0x535   : > { %v2191_v37 = vmax.f32 %v2151_v40, 0.0  ;;  %v2213_v0 = vpack.c.bf16 %v2193_v35, %v2192_v60 }
 0x537   : > { %v2212_v39 = vpack.c.bf16 %v2191_v37, %v2190_v26 }
 0x539   : > { %3374 = vmatprep.mubr.msk.bf16.mxu1 %vm764_vm0, %v2212_v39 }
 0x53a   : > { %3375 = vmatmul.mubr.msk.bf16.gmra.mxu1 %vm764_vm0, %v2213_v0 }
 0x5c2   : > { %v3348_v42 = vpop.f32.mrf.mxu1 }
 0x5c3   : > { %v2324_v16 = vadd.f32 %v3348_v42, %v4213_v10 }
 0x5c4   : > { %v2315_v22 = vpop.f32.mrf.mxu1 }
 0x5c5   : > { %v2316_v44 = vadd.f32 %v4213_v10, %v2315_v22  ;;  %v2444_v43 = vmax.f32 %v2324_v16, 0.0 }
 0x5c6   : > { %v3349_v1 = vpop.f32.mrf.mxu1 }
 0x5c7   : > { %v2327_v34 = vadd.f32 %v3349_v1, %v4213_v10  ;;  %v2442_v51 = vmax.f32 %v2316_v44, 0.0 }
 0x5c8   : > { %v2318_v21 = vpop.f32.mrf.mxu1 }
 0x5c9   : > { %v2319_v27 = vadd.f32 %v4213_v10, %v2318_v21  ;;  %v2445_v5 = vmax.f32 %v2327_v34, 0.0 }
 0x5ca   : > { %v3352_v3 = vpop.f32.mrf.mxu1 }
 0x5cb   : > { %v2443_v56 = vmax.f32 %v2319_v27, 0.0  ;;  %v2477_v46 = vpack.c.bf16 %v2445_v5, %v2444_v43  ;;  %v2340_v2 = vadd.f32 %v3352_v3, %v4213_v10 }
 0x5cc   : > { %v2331_v4 = vpop.f32.mrf.mxu1 }
 0x5cd   : > { %v2476_v7 = vpack.c.bf16 %v2443_v56, %v2442_v51  ;;  %v2332_v47 = vadd.f32 %v4213_v10, %v2331_v4  ;;  %v2448_v58 = vmax.f32 %v2340_v2, 0.0 }
 0x5ce   : > { %v3353_v23 = vpop.f32.mrf.mxu1 }
 0x5cf   : > { %v2343_v61 = vadd.f32 %v3353_v23, %v4213_v10  ;;  %3380 = vmatprep.mubr.msk.bf16.mxu0 %vm2505_vm1, %v2476_v7  ;;  %v2446_v55 = vmax.f32 %v2332_v47, 0.0 }
 0x5d0   : > { %v2334_v15 = vpop.f32.mrf.mxu1  ;;  %3381 = vmatmul.mubr.msk.bf16.vlgmr.msra.gmra.mxu0 %vm2505_vm1, %v2477_v46 }
 0x5d1   : > { %v2335_v17 = vadd.f32 %v4213_v10, %v2334_v15  ;;  %v2449_v18 = vmax.f32 %v2343_v61, 0.0 }
 0x5d2   : > { %v3356_v19 = vpop.f32.mrf.mxu1 }
 0x5d3   : > { %v2447_v57 = vmax.f32 %v2335_v17, 0.0  ;;  %v2479_v8 = vpack.c.bf16 %v2449_v18, %v2448_v58  ;;  %v2356_v28 = vadd.f32 %v3356_v19, %v4213_v10 }
 0x5d4   : > { %v2347_v59 = vpop.f32.mrf.mxu1 }
 0x5d5   : > { %v2478_v6 = vpack.c.bf16 %v2447_v57, %v2446_v55  ;;  %v2348_v14 = vadd.f32 %v4213_v10, %v2347_v59  ;;  %v2452_v9 = vmax.f32 %v2356_v28, 0.0 }
 0x5d6   : > { %v3357_v30 = vpop.f32.mrf.mxu1 }
 0x5d7   : > { %v2359_v25 = vadd.f32 %v3357_v30, %v4213_v10  ;;  %3384 = vmatprep.mubr.msk.bf16.mxu0 %vm2505_vm1, %v2478_v6  ;;  %v2450_v12 = vmax.f32 %v2348_v14, 0.0 }
 0x5d8   : > { %v2350_v50 = vpop.f32.mrf.mxu1  ;;  %3385 = vmatmul.mubr.msk.bf16.gmra.mxu0 %vm2505_vm1, %v2479_v8 }
 0x5d9   : > { %v2351_v45 = vadd.f32 %v4213_v10, %v2350_v50  ;;  %v2453_v52 = vmax.f32 %v2359_v25, 0.0 }
 0x5da   : > { %v3360_v32 = vpop.f32.mrf.mxu1 }
 0x5db   : > { %v2451_v53 = vmax.f32 %v2351_v45, 0.0  ;;  %v2481_v11 = vpack.c.bf16 %v2453_v52, %v2452_v9  ;;  %v2372_v31 = vadd.f32 %v3360_v32, %v4213_v10 }
 0x5dc   : > { %v2363_v54 = vpop.f32.mrf.mxu1 }
 0x5dd   : > { %v2480_v33 = vpack.c.bf16 %v2451_v53, %v2450_v12  ;;  %v2364_v38 = vadd.f32 %v4213_v10, %v2363_v54  ;;  %v2456_v41 = vmax.f32 %v2372_v31, 0.0 }
 0x5de   : > { %v3361_v13 = vpop.f32.mrf.mxu1 }
 0x5df   : > { %v2375_v62 = vadd.f32 %v3361_v13, %v4213_v10  ;;  %3388 = vmatprep.mubr.msk.bf16.mxu0 %vm2505_vm1, %v2480_v33  ;;  %v2454_v63 = vmax.f32 %v2364_v38, 0.0 }
 0x5e0   : > { %v2366_v36 = vpop.f32.mrf.mxu1  ;;  %3389 = vmatmul.mubr.msk.bf16.gmra.mxu0 %vm2505_vm1, %v2481_v11 }
 0x5e1   : > { %v2367_v24 = vadd.f32 %v4213_v10, %v2366_v36  ;;  %v2457_v48 = vmax.f32 %v2375_v62, 0.0 }
 0x5e2   : > { %v3364_v49 = vpop.f32.mrf.mxu1 }
 0x5e3   : > { %v2455_v29 = vmax.f32 %v2367_v24, 0.0  ;;  %v2483_v35 = vpack.c.bf16 %v2457_v48, %v2456_v41  ;;  %v2388_v39 = vadd.f32 %v3364_v49, %v4213_v10  ;;  %v4266_v24 = vld [vmem:[%s4354_s12] ss:$0 sm:$0xff] }
 0x5e4   : > { %v2379_v20 = vpop.f32.mrf.mxu1 }
 0x5e5   : > { %v2482_v40 = vpack.c.bf16 %v2455_v29, %v2454_v63  ;;  %v2380_v37 = vadd.f32 %v4213_v10, %v2379_v20  ;;  %v2460_v16 = vmax.f32 %v2388_v39, 0.0 }
 0x5e6   : > { %v3365_v26 = vpop.f32.mrf.mxu1 }
 0x5e7   : > { %v2391_v60 = vadd.f32 %v3365_v26, %v4213_v10  ;;  %3392 = vmatprep.mubr.msk.bf16.mxu0 %vm2505_vm1, %v2482_v40  ;;  %v2458_v44 = vmax.f32 %v2380_v37, 0.0 }
 0x5e8   : > { %v2382_v0 = vpop.f32.mrf.mxu1  ;;  %3393 = vmatmul.mubr.msk.bf16.gmra.mxu0 %vm2505_vm1, %v2483_v35 }
 0x5e9   : > { %v2383_v42 = vadd.f32 %v4213_v10, %v2382_v0  ;;  %v2461_v22 = vmax.f32 %v2391_v60, 0.0 }
 0x5ea   : > { %v3368_v1 = vpop.f32.mrf.mxu1 }
 0x5eb   : > { %v2459_v34 = vmax.f32 %v2383_v42, 0.0  ;;  %v2485_v5 = vpack.c.bf16 %v2461_v22, %v2460_v16  ;;  %v2404_v43 = vadd.f32 %v3368_v1, %v4213_v10 }
 0x5ec   : > { %v2395_v21 = vpop.f32.mrf.mxu1 }
 0x5ed   : > { %v2484_v27 = vpack.c.bf16 %v2459_v34, %v2458_v44  ;;  %v2396_v51 = vadd.f32 %v4213_v10, %v2395_v21  ;;  %v2464_v2 = vmax.f32 %v2404_v43, 0.0 }
 0x5ee   : > { %v3369_v3 = vpop.f32.mrf.mxu1 }
 0x5ef   : > { %v2407_v56 = vadd.f32 %v3369_v3, %v4213_v10  ;;  %3396 = vmatprep.mubr.msk.bf16.mxu0 %vm2505_vm1, %v2484_v27  ;;  %v2462_v47 = vmax.f32 %v2396_v51, 0.0 }
 0x5f0   : > { %v2398_v4 = vpop.f32.mrf.mxu1  ;;  %3397 = vmatmul.mubr.msk.bf16.gmra.mxu0 %vm2505_vm1, %v2485_v5 }
 0x5f1   : > { %v2399_v7 = vadd.f32 %v4213_v10, %v2398_v4  ;;  %v2465_v46 = vmax.f32 %v2407_v56, 0.0 }
 0x5f2   : > { %v3372_v23 = vpop.f32.mrf.mxu1 }
 0x5f3   : > { %v2463_v61 = vmax.f32 %v2399_v7, 0.0  ;;  %v2487_v18 = vpack.c.bf16 %v2465_v46, %v2464_v2  ;;  %v2420_v58 = vadd.f32 %v3372_v23, %v4213_v10 }
 0x5f4   : > { %v2411_v15 = vpop.f32.mrf.mxu1 }
 0x5f5   : > { %v2486_v17 = vpack.c.bf16 %v2463_v61, %v2462_v47  ;;  %v2412_v55 = vadd.f32 %v4213_v10, %v2411_v15  ;;  %v2468_v28 = vmax.f32 %v2420_v58, 0.0 }
 0x5f6   : > { %v3373_v19 = vpop.f32.mrf.mxu1 }
 0x5f7   : > { %v2423_v57 = vadd.f32 %v3373_v19, %v4213_v10  ;;  %3400 = vmatprep.mubr.msk.bf16.mxu0 %vm2505_vm1, %v2486_v17  ;;  %v2466_v14 = vmax.f32 %v2412_v55, 0.0 }
 0x5f8   : > { %v2414_v59 = vpop.f32.mrf.mxu1  ;;  %3401 = vmatmul.mubr.msk.bf16.gmra.mxu0 %vm2505_vm1, %v2487_v18 }
 0x5f9   : > { %v2415_v6 = vadd.f32 %v4213_v10, %v2414_v59  ;;  %v2469_v8 = vmax.f32 %v2423_v57, 0.0 }
 0x5fa   : > { %v3376_v30 = vpop.f32.mrf.mxu1 }
 0x5fb   : > { %v2467_v25 = vmax.f32 %v2415_v6, 0.0  ;;  %v2489_v52 = vpack.c.bf16 %v2469_v8, %v2468_v28  ;;  %v2436_v9 = vadd.f32 %v3376_v30, %v4213_v10 }
 0x5fc   : > { %v2427_v50 = vpop.f32.mrf.mxu1 }
 0x5fd   : > { %v2488_v45 = vpack.c.bf16 %v2467_v25, %v2466_v14  ;;  %v2428_v12 = vadd.f32 %v4213_v10, %v2427_v50  ;;  %v2472_v62 = vmax.f32 %v2436_v9, 0.0 }
 0x5fe   : > { %v3377_v32 = vpop.f32.mrf.mxu1 }
 0x5ff   : > { %v2439_v53 = vadd.f32 %v3377_v32, %v4213_v10  ;;  %3404 = vmatprep.mubr.msk.bf16.mxu0 %vm2505_vm1, %v2488_v45  ;;  %v2470_v13 = vmax.f32 %v2428_v12, 0.0 }
 0x600   : > { %v2430_v54 = vpop.f32.mrf.mxu1  ;;  %3405 = vmatmul.mubr.msk.bf16.gmra.mxu0 %vm2505_vm1, %v2489_v52 }
 0x601   : > { %v2431_v33 = vadd.f32 %v4213_v10, %v2430_v54  ;;  %v2473_v11 = vmax.f32 %v2439_v53, 0.0 }
 0x603   : > { %v2471_v38 = vmax.f32 %v2431_v33, 0.0  ;;  %v2491_v36 = vpack.c.bf16 %v2473_v11, %v2472_v62 }
 0x605   : > { %v2490_v31 = vpack.c.bf16 %v2471_v38, %v2470_v13 }
 0x607   : > { %3408 = vmatprep.mubr.msk.bf16.mxu0 %vm2505_vm1, %v2490_v31 }
 0x608   : > { %3409 = vmatmul.mubr.msk.bf16.gmra.mxu0 %vm2505_vm1, %v2491_v36 }
 0x690   : > { %v3382_v10 = vpop.f32.mrf.mxu0 }
 0x691   : > { %v2597_v48 = vadd.f32 %v3382_v10, %v4266_v24 }
 0x692   : > { %v2588_v49 = vpop.f32.mrf.mxu0 }
 0x693   : > { %2717 = vst [vmem:[%s4273_s19 + $0x10] sm:$0xff] %v2597_v48  ;;  %v2589_v63 = vadd.f32 %v4266_v24, %v2588_v49 }
 0x694   : > { %v3383_v29 = vpop.f32.mrf.mxu0 }
 0x695   : > { %2715 = vst [vmem:[%s4273_s19] sm:$0xff] %v2589_v63  ;;  %v2600_v41 = vadd.f32 %v3383_v29, %v4266_v24 }
 0x696   : > { %v2591_v20 = vpop.f32.mrf.mxu0 }
 0x697   : > { %2718 = vst [vmem:[%s4273_s19 + $0x18] sm:$0xff] %v2600_v41  ;;  %v2592_v40 = vadd.f32 %v4266_v24, %v2591_v20 }
 0x698   : > { %v3386_v35 = vpop.f32.mrf.mxu0 }
 0x699   : > { %2716 = vst [vmem:[%s4273_s19 + $0x8] sm:$0xff] %v2592_v40  ;;  %v2613_v26 = vadd.f32 %v3386_v35, %v4266_v24 }
 0x69a   : > { %v2604_v37 = vpop.f32.mrf.mxu0 }
 0x69b   : > { %2721 = vst [vmem:[%s4273_s19 + $0x30] sm:$0xff] %v2613_v26  ;;  %v2605_v60 = vadd.f32 %v4266_v24, %v2604_v37 }
 0x69c   : > { %v3387_v39 = vpop.f32.mrf.mxu0 }
 0x69d   : > { %2719 = vst [vmem:[%s4273_s19 + $0x20] sm:$0xff] %v2605_v60  ;;  %v2616_v0 = vadd.f32 %v3387_v39, %v4266_v24 }
 0x69e   : > { %v2607_v42 = vpop.f32.mrf.mxu0 }
 0x69f   : > { %2722 = vst [vmem:[%s4273_s19 + $0x38] sm:$0xff] %v2616_v0  ;;  %v2608_v22 = vadd.f32 %v4266_v24, %v2607_v42 }
 0x6a0   : > { %v3390_v1 = vpop.f32.mrf.mxu0 }
 0x6a1   : > { %2720 = vst [vmem:[%s4273_s19 + $0x28] sm:$0xff] %v2608_v22  ;;  %v2629_v44 = vadd.f32 %v3390_v1, %v4266_v24 }
 0x6a2   : > { %v2620_v34 = vpop.f32.mrf.mxu0 }
 0x6a3   : > { %2725 = vst [vmem:[%s4273_s19 + $0x50] sm:$0xff] %v2629_v44  ;;  %v2621_v16 = vadd.f32 %v4266_v24, %v2620_v34 }
 0x6a4   : > { %v3391_v21 = vpop.f32.mrf.mxu0 }
 0x6a5   : > { %2723 = vst [vmem:[%s4273_s19 + $0x40] sm:$0xff] %v2621_v16  ;;  %v2632_v27 = vadd.f32 %v3391_v21, %v4266_v24 }
 0x6a6   : > { %v2623_v5 = vpop.f32.mrf.mxu0 }
 0x6a7   : > { %2726 = vst [vmem:[%s4273_s19 + $0x58] sm:$0xff] %v2632_v27  ;;  %v2624_v3 = vadd.f32 %v4266_v24, %v2623_v5 }
 0x6a8   : > { %v3394_v51 = vpop.f32.mrf.mxu0 }
 0x6a9   : > { %2724 = vst [vmem:[%s4273_s19 + $0x48] sm:$0xff] %v2624_v3  ;;  %v2645_v56 = vadd.f32 %v3394_v51, %v4266_v24 }
 0x6aa   : > { %v2636_v43 = vpop.f32.mrf.mxu0 }
 0x6ab   : > { %2729 = vst [vmem:[%s4273_s19 + $0x70] sm:$0xff] %v2645_v56  ;;  %v2637_v4 = vadd.f32 %v4266_v24, %v2636_v43 }
 0x6ac   : > { %v3395_v7 = vpop.f32.mrf.mxu0 }
 0x6ad   : > { %2727 = vst [vmem:[%s4273_s19 + $0x60] sm:$0xff] %v2637_v4  ;;  %v2648_v46 = vadd.f32 %v3395_v7, %v4266_v24 }
 0x6ae   : > { %v2639_v23 = vpop.f32.mrf.mxu0 }
 0x6af   : > { %2730 = vst [vmem:[%s4273_s19 + $0x78] sm:$0xff] %v2648_v46  ;;  %v2640_v47 = vadd.f32 %v4266_v24, %v2639_v23 }
 0x6b0   : > { %v3398_v61 = vpop.f32.mrf.mxu0 }
 0x6b1   : > { %2728 = vst [vmem:[%s4273_s19 + $0x68] sm:$0xff] %v2640_v47  ;;  %v2661_v2 = vadd.f32 %v3398_v61, %v4266_v24 }
 0x6b2   : > { %v2652_v15 = vpop.f32.mrf.mxu0 }
 0x6b3   : > { %2733 = vst [vmem:[%s4273_s19 + $0x90] sm:$0xff] %v2661_v2  ;;  %v2653_v17 = vadd.f32 %v4266_v24, %v2652_v15 }
 0x6b4   : > { %v3399_v18 = vpop.f32.mrf.mxu0 }
 0x6b5   : > { %2731 = vst [vmem:[%s4273_s19 + $0x80] sm:$0xff] %v2653_v17  ;;  %v2664_v19 = vadd.f32 %v3399_v18, %v4266_v24 }
 0x6b6   : > { %v2655_v55 = vpop.f32.mrf.mxu0 }
 0x6b7   : > { %2734 = vst [vmem:[%s4273_s19 + $0x98] sm:$0xff] %v2664_v19  ;;  %v2656_v57 = vadd.f32 %v4266_v24, %v2655_v55 }
 0x6b8   : > { %v3402_v58 = vpop.f32.mrf.mxu0 }
 0x6b9   : > { %2732 = vst [vmem:[%s4273_s19 + $0x88] sm:$0xff] %v2656_v57  ;;  %v2677_v59 = vadd.f32 %v3402_v58, %v4266_v24 }
 0x6ba   : > { %v2668_v6 = vpop.f32.mrf.mxu0 }
 0x6bb   : > { %2737 = vst [vmem:[%s4273_s19 + $0xb0] sm:$0xff] %v2677_v59  ;;  %v2669_v8 = vadd.f32 %v4266_v24, %v2668_v6 }
 0x6bc   : > { %v3403_v30 = vpop.f32.mrf.mxu0 }
 0x6bd   : > { %2735 = vst [vmem:[%s4273_s19 + $0xa0] sm:$0xff] %v2669_v8  ;;  %v2680_v14 = vadd.f32 %v3403_v30, %v4266_v24 }
 0x6be   : > { %v2671_v25 = vpop.f32.mrf.mxu0 }
 0x6bf   : > { %2738 = vst [vmem:[%s4273_s19 + $0xb8] sm:$0xff] %v2680_v14  ;;  %v2672_v28 = vadd.f32 %v4266_v24, %v2671_v25 }
 0x6c0   : > { %v3406_v50 = vpop.f32.mrf.mxu0 }
 0x6c1   : > { %2736 = vst [vmem:[%s4273_s19 + $0xa8] sm:$0xff] %v2672_v28  ;;  %v2693_v45 = vadd.f32 %v3406_v50, %v4266_v24 }
 0x6c2   : > { %v2684_v52 = vpop.f32.mrf.mxu0 }
 0x6c3   : > { %2741 = vst [vmem:[%s4273_s19 + $0xd0] sm:$0xff] %v2693_v45  ;;  %v2685_v32 = vadd.f32 %v4266_v24, %v2684_v52 }
 0x6c4   : > { %v3407_v12 = vpop.f32.mrf.mxu0 }
 0x6c5   : > { %2739 = vst [vmem:[%s4273_s19 + $0xc0] sm:$0xff] %v2685_v32  ;;  %v2696_v53 = vadd.f32 %v3407_v12, %v4266_v24 }
 0x6c6   : > { %v2687_v9 = vpop.f32.mrf.mxu0 }
 0x6c7   : > { %2742 = vst [vmem:[%s4273_s19 + $0xd8] sm:$0xff] %v2696_v53  ;;  %v2688_v54 = vadd.f32 %v4266_v24, %v2687_v9 }
 0x6c8   : > { %v3410_v33 = vpop.f32.mrf.mxu0 }
 0x6c9   : > { %2740 = vst [vmem:[%s4273_s19 + $0xc8] sm:$0xff] %v2688_v54  ;;  %v2709_v11 = vadd.f32 %v3410_v33, %v4266_v24 }
 0x6ca   : > { %v2700_v13 = vpop.f32.mrf.mxu0 }
 0x6cb   : > { %2745 = vst [vmem:[%s4273_s19 + $0xf0] sm:$0xff] %v2709_v11  ;;  %v2701_v38 = vadd.f32 %v4266_v24, %v2700_v13 }
 0x6cc   : > { %v3411_v62 = vpop.f32.mrf.mxu0 }
 0x6cd   : > { %2743 = vst [vmem:[%s4273_s19 + $0xe0] sm:$0xff] %v2701_v38  ;;  %v2712_v31 = vadd.f32 %v3411_v62, %v4266_v24 }
 0x6ce   : > { %v2703_v36 = vpop.f32.mrf.mxu0 }
 0x6cf   : > { %2746 = vst [vmem:[%s4273_s19 + $0xf8] sm:$0xff] %v2712_v31  ;;  %v2704_v10 = vadd.f32 %v4266_v24, %v2703_v36 }
 0x6d1   : > { %2744 = vst [vmem:[%s4273_s19 + $0xe8] sm:$0xff] %v2704_v10 }
 0x6d2 PF: > { %s23_s25 = sadd.s32 1, %s3451_s25  }
 0x6d3   : > { %p20_p4 = scmp.ge.s32.totalorder %s23_s25, 4  }
 0x6d5   :  { %22 = sbr.rel (!%p20_p4) target bundleno = 1 (0x1), region = 106 }

</bundles_post_ra>
